<compile_context>
chip_gen: v5e
topology: v5e:2x2
jax: 0.10.0
libtpu: 0.0.40
codegen_flags: <defaults>
</compile_context>

<pallas_src>
import functools

import jax
import jax.numpy as jnp
from jax.experimental import pallas as pl
from jax.experimental.pallas import tpu as pltpu


def _round_up(x, m):
    return (x + m - 1) // m * m


def _fused_mlp_kernel(x_ref, w1_ref, b1_ref, w2_ref, b2_ref, w3_ref, b3_ref,
                      o_ref, h1_acc):
    """Fused fc1 -> ReLU -> fc2 -> ReLU -> fc3.

    Grid: 1-D over K tiles of fc1's contraction dim.  fc1 accumulates bf16xbf16
    MXU partials into an f32 VMEM scratch; the last K step runs the fc2/fc3
    epilogue (weights resident in VMEM) and stores the output.
    """
    k = pl.program_id(0)

    @pl.when(k == 0)
    def _init():
        h1_acc[...] = jnp.zeros_like(h1_acc)

    # bf16 x bf16 -> f32 accumulate: the native MXU mode on v5e/v6e/v7x.
    # No per-step weight upcast (that cost VPU cycles + an f32 weight copy).
    h1_acc[...] += jnp.dot(
        x_ref[...], w1_ref[...], preferred_element_type=jnp.float32
    )

    @pl.when(k == pl.num_programs(0) - 1)
    def _epilogue():
        # Bias + ReLU applied only after the FULL accumulation, so the zero
        # padding of W1 rows / x columns stays a numerical no-op.
        h1 = jnp.maximum(h1_acc[...] + b1_ref[...], 0.0)          # ReLU(fc1), f32
        h2 = jnp.dot(h1.astype(w2_ref.dtype), w2_ref[...],
                     preferred_element_type=jnp.float32)
        h2 = jnp.maximum(h2 + b2_ref[...], 0.0)                   # ReLU(fc2), f32
        y = jnp.dot(h2.astype(w3_ref.dtype), w3_ref[...],
                    preferred_element_type=jnp.float32)
        o_ref[...] = (y + b3_ref[...]).astype(o_ref.dtype)        # fc3


def init_linear_params(key, in_features, out_features, dtype=jnp.float32):
    """PyTorch nn.Linear default init: U(-1/sqrt(in), 1/sqrt(in))."""
    kw, kb = jax.random.split(key)
    bound = 1.0 / (in_features ** 0.5)
    w = jax.random.uniform(kw, (out_features, in_features), dtype,
                           minval=-bound, maxval=bound)
    b = jax.random.uniform(kb, (out_features,), dtype,
                           minval=-bound, maxval=bound)
    return w, b


def prepare_params(torch_params, *, k_tile=7296, weight_dtype=jnp.bfloat16):
    """One-time parameter prep (NOT in the forward path).

    Transposes PyTorch (out, in) weights to (in, out) so the kernel computes
    y = x @ W, zero-pads fc1's input dim to a multiple of k_tile, casts weights
    to bf16 (halves the HBM weight stream), and reshapes biases to f32 (1, N).
    """
    (w1, b1), (w2, b2), (w3, b3) = torch_params
    K = w1.shape[1]
    K_pad = _round_up(K, k_tile)

    def prep_w(w, pad_rows=0):
        wt = jnp.transpose(w)                       # (in, out)
        if pad_rows:
            wt = jnp.pad(wt, ((0, pad_rows), (0, 0)))
        return wt.astype(weight_dtype)

    def prep_b(b):
        return b.astype(jnp.float32).reshape(1, -1)

    return (prep_w(w1, K_pad - K), prep_b(b1),
            prep_w(w2), prep_b(b2),
            prep_w(w3), prep_b(b3))


def embedding_forward(x, params, *, k_tile=7296):
    """Forward pass.  x: (M, K) f32, params from prepare_params (same k_tile)."""
    w1, b1, w2, b2, w3, b3 = params
    M, K = x.shape
    K_pad, H1 = w1.shape
    H2 = w2.shape[1]
    NO = w3.shape[1]

    k_tile = min(k_tile, K_pad)
    assert k_tile % 128 == 0, "K tile must be lane-aligned"
    assert K_pad % k_tile == 0, "prepare_params must use the same k_tile"

    # One-time bf16 cast of the activations so fc1 runs as a native bf16 MXU
    # matmul (f32 accumulation happens inside the kernel's VMEM scratch).
    xb = x.astype(w1.dtype)
    if K_pad != K:
        xb = jnp.pad(xb, ((0, 0), (0, K_pad - K)))  # zero cols: no-op in the sum

    grid = (K_pad // k_tile,)

    return pl.pallas_call(
        _fused_mlp_kernel,
        out_shape=jax.ShapeDtypeStruct((M, NO), x.dtype),
        grid_spec=pltpu.PrefetchScalarGridSpec(
            num_scalar_prefetch=0,
            grid=grid,
            in_specs=[
                pl.BlockSpec((M, k_tile), lambda k: (0, k)),   # x K-tile (bf16)
                pl.BlockSpec((k_tile, H1), lambda k: (k, 0)),  # W1 K-tile (streamed)
                pl.BlockSpec((1, H1), lambda k: (0, 0)),       # b1 (resident)
                pl.BlockSpec((H1, H2), lambda k: (0, 0)),      # W2 (resident)
                pl.BlockSpec((1, H2), lambda k: (0, 0)),       # b2 (resident)
                pl.BlockSpec((H2, NO), lambda k: (0, 0)),      # W3 (resident)
                pl.BlockSpec((1, NO), lambda k: (0, 0)),       # b3 (resident)
            ],
            out_specs=pl.BlockSpec((M, NO), lambda k: (0, 0)),
            scratch_shapes=[pltpu.VMEM((M, H1), jnp.float32)],  # fc1 f32 accumulator
        ),
        compiler_params=pltpu.CompilerParams(
            dimension_semantics=("arbitrary",),        # K is a reduction axis
            vmem_limit_bytes=48 * 1024 * 1024,         # headroom for large K tiles
        ),
    )(xb, w1, b1, w2, b2, w3, b3)


if __name__ == "__main__":
    # Small shapes consistent with the module: input_size -> 512 -> 256 -> out.
    # input_size=1000 is deliberately NOT a tile multiple to exercise K padding,
    # and k_tile=512 gives a 2-step grid to exercise the accumulator path.
    batch = 8
    input_size = 1000          # stands in for the default 14461
    hidden1, hidden2 = 512, 256
    out_features = 64
    k_tile = 512               # small-shape tile; default 7296 for the real size

    key = jax.random.PRNGKey(0)
    kx, k1, k2, k3 = jax.random.split(key, 4)

    x = jax.random.normal(kx, (batch, input_size), dtype=jnp.float32)
    torch_params = [
        init_linear_params(k1, input_size, hidden1),
        init_linear_params(k2, hidden1, hidden2),
        init_linear_params(k3, hidden2, out_features),
    ]
    params = prepare_params(torch_params, k_tile=k_tile)

    fwd = jax.jit(functools.partial(embedding_forward, k_tile=k_tile))
    y = fwd(x, params)
    jax.block_until_ready(y)

    # Reference: same math as the PyTorch forward, using the SAME bf16 operand
    # precisions the kernel consumes (bf16 inputs, f32 accumulate, f32 bias),
    # so the tolerance check stays tight.
    w1, b1, w2, b2, w3, b3 = params
    xb = x.astype(jnp.bfloat16)
    h1 = jnp.dot(xb, w1[:input_size], preferred_element_type=jnp.float32) + b1
    h1 = jnp.maximum(h1, 0.0)
    h2 = jnp.dot(h1.astype(jnp.bfloat16), w2,
                 preferred_element_type=jnp.float32) + b2
    h2 = jnp.maximum(h2, 0.0)
    ref = jnp.dot(h2.astype(jnp.bfloat16), w3,
                  preferred_element_type=jnp.float32) + b3

    assert y.shape == (batch, out_features)
    err = float(jnp.max(jnp.abs(y - ref.astype(y.dtype))))
    assert jnp.allclose(y, ref.astype(y.dtype), atol=2e-3, rtol=2e-3), \
        f"max abs err {err}"

    print("KERNEL_OK")
</pallas_src>

<mosaic_0001>
module attributes {stable_mosaic.version = 11 : i64} {
  func.func @_fused_mlp_kernel(%arg0: i32, %arg1: memref<8x512xbf16, #tpu.memory_space<vmem>>, %arg2: memref<512x512xbf16, #tpu.memory_space<vmem>>, %arg3: memref<1x512xf32, #tpu.memory_space<vmem>>, %arg4: memref<512x256xbf16, #tpu.memory_space<vmem>>, %arg5: memref<1x256xf32, #tpu.memory_space<vmem>>, %arg6: memref<256x64xbf16, #tpu.memory_space<vmem>>, %arg7: memref<1x64xf32, #tpu.memory_space<vmem>>, %arg8: memref<8x64xf32, #tpu.memory_space<vmem>>, %arg9: memref<8x512xf32, #tpu.memory_space<vmem>>) attributes {dimension_semantics = [#tpu.dimension_semantics<arbitrary>], iteration_bounds = array<i64: 2>, scalar_prefetch = 0 : i64, scratch_operands = 1 : i64, tpu.core_type = #tpu.core_type<tc>, window_params = [{transform_indices = @transform_0, window_bounds = array<i64: 8, 512>}, {transform_indices = @transform_1, window_bounds = array<i64: 512, 512>}, {pipeline_mode = #tpu.pipeline_mode<synchronous>, transform_indices = @transform_2, window_bounds = array<i64: 1, 512>}, {pipeline_mode = #tpu.pipeline_mode<synchronous>, transform_indices = @transform_3, window_bounds = array<i64: 512, 256>}, {pipeline_mode = #tpu.pipeline_mode<synchronous>, transform_indices = @transform_4, window_bounds = array<i64: 1, 256>}, {pipeline_mode = #tpu.pipeline_mode<synchronous>, transform_indices = @transform_5, window_bounds = array<i64: 256, 64>}, {pipeline_mode = #tpu.pipeline_mode<synchronous>, transform_indices = @transform_6, window_bounds = array<i64: 1, 64>}, {pipeline_mode = #tpu.pipeline_mode<synchronous>, transform_indices = @transform_7, window_bounds = array<i64: 8, 64>}]} {
    %c0_i32 = arith.constant 0 : i32
    %0 = arith.cmpi eq, %arg0, %c0_i32 : i32
    %1 = arith.extui %0 : i1 to i32
    %c0_i32_0 = arith.constant 0 : i32
    %2 = arith.cmpi ne, %1, %c0_i32_0 : i32
    scf.if %2 {
      %cst_9 = arith.constant 0.000000e+00 : f32
      %12 = vector.broadcast %cst_9 : f32 to vector<8x512xf32>
      %c0_10 = arith.constant 0 : index
      %c0_11 = arith.constant 0 : index
      %13 = vector.load %arg9[%c0_10, %c0_11] : memref<8x512xf32, #tpu.memory_space<vmem>>, vector<8x512xf32>
      tpu.vector_store %arg9[%c0_10, %c0_11], %12 {strides = array<i32>} : memref<8x512xf32, #tpu.memory_space<vmem>>, vector<8x512xf32>,
    } else {
    }
    %c0 = arith.constant 0 : index
    %c0_1 = arith.constant 0 : index
    %3 = vector.load %arg9[%c0, %c0_1] : memref<8x512xf32, #tpu.memory_space<vmem>>, vector<8x512xf32>
    %c0_2 = arith.constant 0 : index
    %c0_3 = arith.constant 0 : index
    %4 = vector.load %arg1[%c0_2, %c0_3] : memref<8x512xbf16, #tpu.memory_space<vmem>>, vector<8x512xbf16>
    %c0_4 = arith.constant 0 : index
    %c0_5 = arith.constant 0 : index
    %5 = vector.load %arg2[%c0_4, %c0_5] : memref<512x512xbf16, #tpu.memory_space<vmem>>, vector<512x512xbf16>
    %cst = arith.constant dense<0.000000e+00> : vector<8x512xf32>
    %6 = tpu.matmul %4, %5, %cst {dimension_numbers = #tpu.dot_dimension_numbers<[1], [0], [0], [1], [0, 0, 1, 1], [], []>} : vector<8x512xbf16>, vector<512x512xbf16>, vector<8x512xf32> -> vector<8x512xf32>
    %7 = arith.addf %3, %6 : vector<8x512xf32>
    %c0_6 = arith.constant 0 : index
    %c0_7 = arith.constant 0 : index
    %8 = vector.load %arg9[%c0_6, %c0_7] : memref<8x512xf32, #tpu.memory_space<vmem>>, vector<8x512xf32>
    tpu.vector_store %arg9[%c0_6, %c0_7], %7 {strides = array<i32>} : memref<8x512xf32, #tpu.memory_space<vmem>>, vector<8x512xf32>,
    %c1_i32 = arith.constant 1 : i32
    %9 = arith.cmpi eq, %arg0, %c1_i32 : i32
    %10 = arith.extui %9 : i1 to i32
    %c0_i32_8 = arith.constant 0 : i32
    %11 = arith.cmpi ne, %10, %c0_i32_8 : i32
    scf.if %11 {
      %c0_9 = arith.constant 0 : index
      %c0_10 = arith.constant 0 : index
      %12 = vector.load %arg9[%c0_9, %c0_10] : memref<8x512xf32, #tpu.memory_space<vmem>>, vector<8x512xf32>
      %c0_11 = arith.constant 0 : index
      %c0_12 = arith.constant 0 : index
      %13 = vector.load %arg3[%c0_11, %c0_12] : memref<1x512xf32, #tpu.memory_space<vmem>>, vector<1x512xf32>
      %14 = vector.broadcast %13 : vector<1x512xf32> to vector<8x512xf32>
      %15 = arith.addf %12, %14 : vector<8x512xf32>
      %cst_13 = arith.constant 0.000000e+00 : f32
      %16 = vector.broadcast %cst_13 : f32 to vector<8x512xf32>
      %17 = arith.maximumf %15, %16 : vector<8x512xf32>
      %18 = arith.truncf %17 : vector<8x512xf32> to vector<8x512xbf16>
      %c0_14 = arith.constant 0 : index
      %c0_15 = arith.constant 0 : index
      %19 = vector.load %arg4[%c0_14, %c0_15] : memref<512x256xbf16, #tpu.memory_space<vmem>>, vector<512x256xbf16>
      %cst_16 = arith.constant dense<0.000000e+00> : vector<8x256xf32>
      %20 = tpu.matmul %18, %19, %cst_16 {dimension_numbers = #tpu.dot_dimension_numbers<[1], [0], [0], [1], [0, 0, 1, 1], [], []>} : vector<8x512xbf16>, vector<512x256xbf16>, vector<8x256xf32> -> vector<8x256xf32>
      %c0_17 = arith.constant 0 : index
      %c0_18 = arith.constant 0 : index
      %21 = vector.load %arg5[%c0_17, %c0_18] : memref<1x256xf32, #tpu.memory_space<vmem>>, vector<1x256xf32>
      %22 = vector.broadcast %21 : vector<1x256xf32> to vector<8x256xf32>
      %23 = arith.addf %20, %22 : vector<8x256xf32>
      %cst_19 = arith.constant 0.000000e+00 : f32
      %24 = vector.broadcast %cst_19 : f32 to vector<8x256xf32>
      %25 = arith.maximumf %23, %24 : vector<8x256xf32>
      %26 = arith.truncf %25 : vector<8x256xf32> to vector<8x256xbf16>
      %c0_20 = arith.constant 0 : index
      %c0_21 = arith.constant 0 : index
      %27 = vector.load %arg6[%c0_20, %c0_21] : memref<256x64xbf16, #tpu.memory_space<vmem>>, vector<256x64xbf16>
      %cst_22 = arith.constant dense<0.000000e+00> : vector<8x64xf32>
      %28 = tpu.matmul %26, %27, %cst_22 {dimension_numbers = #tpu.dot_dimension_numbers<[1], [0], [0], [1], [0, 0, 1, 1], [], []>} : vector<8x256xbf16>, vector<256x64xbf16>, vector<8x64xf32> -> vector<8x64xf32>
      %c0_23 = arith.constant 0 : index
      %c0_24 = arith.constant 0 : index
      %29 = vector.load %arg7[%c0_23, %c0_24] : memref<1x64xf32, #tpu.memory_space<vmem>>, vector<1x64xf32>
      %30 = vector.broadcast %29 : vector<1x64xf32> to vector<8x64xf32>
      %31 = arith.addf %28, %30 : vector<8x64xf32>
      %c0_25 = arith.constant 0 : index
      %c0_26 = arith.constant 0 : index
      %32 = vector.load %arg8[%c0_25, %c0_26] : memref<8x64xf32, #tpu.memory_space<vmem>>, vector<8x64xf32>
      tpu.vector_store %arg8[%c0_25, %c0_26], %31 {strides = array<i32>} : memref<8x64xf32, #tpu.memory_space<vmem>>, vector<8x64xf32>,
    } else {
    }
    return
  }
  func.func @transform_0(%arg0: i32) -> (i32, i32) {
    %c0_i32 = arith.constant 0 : i32
    %c0_i32_0 = arith.constant 0 : i32
    return %c0_i32, %arg0 : i32, i32
  }
  func.func @transform_1(%arg0: i32) -> (i32, i32) {
    %c0_i32 = arith.constant 0 : i32
    %c0_i32_0 = arith.constant 0 : i32
    return %arg0, %c0_i32 : i32, i32
  }
  func.func @transform_2(%arg0: i32) -> (i32, i32) {
    %c0_i32 = arith.constant 0 : i32
    %c0_i32_0 = arith.constant 0 : i32
    %c0_i32_1 = arith.constant 0 : i32
    return %c0_i32, %c0_i32_0 : i32, i32
  }
  func.func @transform_3(%arg0: i32) -> (i32, i32) {
    %c0_i32 = arith.constant 0 : i32
    %c0_i32_0 = arith.constant 0 : i32
    %c0_i32_1 = arith.constant 0 : i32
    return %c0_i32, %c0_i32_0 : i32, i32
  }
  func.func @transform_4(%arg0: i32) -> (i32, i32) {
    %c0_i32 = arith.constant 0 : i32
    %c0_i32_0 = arith.constant 0 : i32
    %c0_i32_1 = arith.constant 0 : i32
    return %c0_i32, %c0_i32_0 : i32, i32
  }
  func.func @transform_5(%arg0: i32) -> (i32, i32) {
    %c0_i32 = arith.constant 0 : i32
    %c0_i32_0 = arith.constant 0 : i32
    %c0_i32_1 = arith.constant 0 : i32
    return %c0_i32, %c0_i32_0 : i32, i32
  }
  func.func @transform_6(%arg0: i32) -> (i32, i32) {
    %c0_i32 = arith.constant 0 : i32
    %c0_i32_0 = arith.constant 0 : i32
    %c0_i32_1 = arith.constant 0 : i32
    return %c0_i32, %c0_i32_0 : i32, i32
  }
  func.func @transform_7(%arg0: i32) -> (i32, i32) {
    %c0_i32 = arith.constant 0 : i32
    %c0_i32_0 = arith.constant 0 : i32
    %c0_i32_1 = arith.constant 0 : i32
    return %c0_i32, %c0_i32_0 : i32, i32
  }
}

</mosaic_0001>

<bundles_post_ra>
// kernel: embedding_forward.1
= control target key start
LH: loop header
LB: loop body
LE: loop exit
PB: predicated region body
PF: predicated region fallthrough
CT: control target
= control target key end

     0   :  { %12 = vsyncpa [#allocation4], 0  ;;  %s3881_s0 = inlined_call_operand.vmem [shape: bf16[8,1024], index: 0, kind: input, shape index: {}]   ;;  %s3882_s1 = inlined_call_operand.hbm [shape: bf16[1024,512], index: 1, kind: input, shape index: {}]   ;;  %s3883_s2 = inlined_call_operand.vmem [shape: f32[1,512], index: 2, kind: input, shape index: {}]   ;;  %s3884_s3 = inlined_call_operand.hbm [shape: bf16[512,256], index: 3, kind: input, shape index: {}]   ;;  %s3885_s4 = inlined_call_operand.vmem [shape: f32[1,256], index: 4, kind: input, shape index: {}]   ;;  %s3886_s5 = inlined_call_operand.vmem [shape: bf16[256,64], index: 5, kind: input, shape index: {}]   ;;  %s3887_s6 = inlined_call_operand.vmem [shape: f32[1,64], index: 6, kind: input, shape index: {}]   ;;  %s3888_s7 = inlined_call_operand.hbm [shape: f32[8,64], index: 7, kind: output, shape index: {}]  }
   0x1   :  { %14 = vsyncpa [#allocation4 + $0x1], 0 }
   0x2   :  { %15 = vsyncpa [#allocation7], 0 }
   0x3   :  { %16 = vsyncpa [#allocation5], 0  ;;  %s3412_s24 = smov 0   ;;  %s3414_s25 = smov 0  }
   0x4   :  { %s3416_s26 = smov 0   ;;  %s3418_s27 = smov 0  }
   0x5 LB: > { %s3431_s28 = sadd.s32 4294967295, %s3363_s27   ;;  %p68_p0 = scmp.ne.s32.totalorder %s3355_s25, %s3351_s24  ;;  %s3363_s27 = sphi %s3418_s27, %s3895_s27   ;;  %s3359_s26 = sphi %s3416_s26, %s3894_s26   ;;  %s3355_s25 = sphi %s3414_s25, %s3893_s25   ;;  %s3351_s24 = sphi %s3412_s24, %s3892_s24  }
   0x6   : > { %p69_p1 = scmp.eq.s32.totalorder %s3431_s28, 0  ;;  %p2110_p2 = scmp.ge.s32.totalorder %s3363_s27, 1 }
   0x7   : > { %p205_p3 = scmp.lt.s32.totalorder %s3363_s27, 3  ;;  %p2111_p4 = scmp.ne.s32.totalorder %s3431_s28, 0 }
   0x8   : > { %p3440_p5 = por %p69_p1, %p68_p0  ;;  %s219_s9 = sshll.u32 %s3884_s3, 4  ;;  %s220_s9 = int_to_ptr.hbm [resolvable:$true] %s219_s9 }
   0x9   : > { %p3447_p6 = pnand %p2110_p2, %p205_p3  ;;  %s3365_s11 = smov [#allocation6]  }
   0xa   : > { %s221_s12 = sshll.u32 %s3365_s11, 4  ;;  %s3456_s13 = sadd.s32 1, %s3363_s27   ;;  %s222_s12 = int_to_ptr.vmem [resolvable:$true] %s221_s12 }
   0xb   : > { %p3180_p7 = pneg %p3447_p6  ;;  %s3366_s14 = smov 128  }
   0xc   : > { %s3367_s15 = smov 8   ;;  %s52_s16 = ssub.s32 %s3363_s27, %s3456_s13 }
   0xd   : > { %p3181_p8 = pnand %p3180_p7, %p69_p1  ;;  %s55_s17 = sadd.s32 1, %s3359_s26 }
   0xe   : > { %p53_p9 = scmp.eq.s32.totalorder %s52_s16, 0  ;;  %p62_p10 = scmp.ne.s32.totalorder %s3359_s26, %s3355_s25 }
   0xf   : > { %3183 = dma.hbm_to_vmem [thread:$0]  (!%p3181_p8), %s220_s9, 8192, %s222_s12, [#allocation7], %s3366_s14, %s3366_s14, %s3367_s15  }
  0x10   : > { %p63_p11 = scmp.eq.s32.totalorder %s3363_s27, 0  ;;  %p3189_p12 = scmp.lt.s32.totalorder %s3363_s27, 2 }
  0x11   : > { %s3466_s18 = scalar_select %p53_p9, %s3359_s26, %s55_s17  }
  0x12   : > { %p64_p13 = por %p63_p11, %p62_p10  ;;  %s253_s19 = sand.u32 1, %s3359_s26  }
  0x13   : > { %s2113_s20 = sshll.u32 %s253_s19, 10  ;;  %s2961_s21 = sshll.u32 %s3363_s27, 10 }
  0x14   : > { %s263_s24 = scalar_lea.hbm %s3882_s1, %s2961_s21  ;;  %s257_s30 = scalar_lea.vmem [#allocation3], %s2113_s20 }
  0x15   : > { %s266_s8 = sshll.u32 %s257_s30, 4  ;;  %s264_s11 = sshll.u32 %s263_s24, 4  ;;  %s267_s8 = int_to_ptr.vmem [resolvable:$true] %s266_s8  ;;  %s265_s11 = int_to_ptr.hbm [resolvable:$true] %s264_s11 }
  0x16   : > { %p3473_p0 = pnand %p3189_p12, %p64_p13  ;;  %s254_s12 = scalar_lea.sflag [#allocation4], %s253_s19 }
  0x17   : > { %s3263_s14 = sshra.s32 %s265_s11, 4  ;;  %s3270_s17 = scalar_lea.hbm %s3882_s1, 2048  ;;  %s3264_s14 = int_to_ptr.hbm [resolvable:$true] %s3263_s14 }
  0x18   : > { %s3265_s15 = scalar_lea.hbm %s3264_s14, 1024  ;;  %p3267_p3 = pneg %p3473_p0 }
  0x19   : > { %p3266_p2 = scmp.ne.s32.totalorder %s3264_s14, %s3265_s15  ;;  %p3271_p9 = scmp.lt.s32.totalorder %s3264_s14, %s3882_s1 }
  0x1a   : > { %p3272_p10 = scmp.lt.s32.totalorder %s3270_s17, %s3265_s15 }
  0x1b   : > { %p3268_p7 = pnand %p3267_p3, %p3266_p2 }
  0x1c   : > { %p3273_p11 = por %p3272_p10, %p3271_p9 }
  0x1d   : > { %p3269_p8 = pneg %p3268_p7 }
  0x1f   : > { %p3274_p12 = pnand %p3273_p11, %p3269_p8 }
  0x21   : > { %3277 = shalt.err (!%p3274_p12)
}
  0x22   : > { %s3368_s19 = smov 256   ;;  %s3369_s22 = smov 16  }
  0x23   : > { %3187 = dma.hbm_to_vmem [thread:$0]  (!%p3473_p0), %s265_s11, 16384, %s267_s8, %s254_s12, %s3368_s19, %s3368_s19, %s3369_s22  }
  0x24   : > { %278 = sbr.rel (%p3447_p6) target bundleno = 675 (0x2a3), region = 48  ;;  %s280_s23 = sand.u32 (!%p3447_p6), 1, %s3355_s25  }
  0x25   : > { %s2118_s24 = sshll.u32 (!%p3447_p6), %s280_s23, 10  ;;  %s281_s30 = scalar_lea.sflag (!%p3447_p6), [#allocation4], %s280_s23 }
  0x26   : > { %s3490_s27 = scalar_lea.vmem (!%p3447_p6), [#allocation3], %s2118_s24 }
  0x29   : > { %3338 = dma.done.wait (%p3440_p5), %s281_s30, 16384  }
  0x2a   : > { %3340 = vsyncadd (%p3440_p5), %s281_s30, 4294950912 }
  0x2b   : > { %3342 = dma.done.wait (%p69_p1), [#allocation7], 8192  }
  0x2c   : > { %3344 = vsyncadd (%p69_p1), [#allocation7], 4294959104  ;;  %s2120_s10 = sshll.u32 %s3431_s28, 2 }
  0x2d   : > { %p322_p6 = scmp.lt.s32.totalorder %s2120_s10, 7  ;;  %331 = sbr.rel (%p2111_p4) target bundleno = 55 (0x37), region = 60 }
  0x2f   : > { %s3897_s10 = smov (!%p322_p6, %s2120_s10), 7 }
  0x30   : > { %s2121_s8 = sshll.u32 %s3897_s10, 2 }
  0x31   : > { %s3504_s12 = scalar_lea.vmem %s3881_s0, %s2121_s8 }
  0x32   : > { %v3370_v0 = vmov 0.0  }
  0x33   : > { %332 = vst [vmem:[#allocation2 + $0x10] sm:$0xff] %v3370_v0 }
  0x34   : > { %333 = vst [vmem:[#allocation2] sm:$0xff] %v3370_v0 }
  0x35   : > { %334 = vst [vmem:[#allocation2 + $0x18] sm:$0xff] %v3370_v0 }
  0x36   : > { %335 = vst [vmem:[#allocation2 + $0x8] sm:$0xff] %v3370_v0 }
  0x37 PF: > { %v2237_v1 = vld [vmem:[%s3490_s27 + $0xe0] sm:$0xf]  ;;  %v2992_v2 = vld [vmem:[%s3490_s27 + $0xec] sm:$0xf0]  ;;  %p2635_p1 = scmp.ne.s32.totalorder %s3431_s28, 1 }
  0x38   : > { %v2365_v3 = vld [vmem:[%s3490_s27 + $0x1e0] sm:$0xf]  ;;  %v2238_v4 = vor.u32 %v2992_v2, %v2237_v1  ;;  %v3024_v5 = vld [vmem:[%s3490_s27 + $0x1ec] sm:$0xf0] }
  0x39   : > { %v2493_v6 = vld [vmem:[%s3490_s27 + $0x2e0] sm:$0xf]  ;;  %v3056_v7 = vld [vmem:[%s3490_s27 + $0x2ec] sm:$0xf0]  ;;  %v2366_v8 = vor.u32 %v3024_v5, %v2365_v3 }
  0x3a   : > { %v2494_v9 = vor.u32 %v3056_v7, %v2493_v6  ;;  %v2621_v10 = vld [vmem:[%s3490_s27 + $0x3e0] sm:$0xf]  ;;  %v3088_v11 = vld [vmem:[%s3490_s27 + $0x3ec] sm:$0xf0]  ;;  %1124 = vmatpush.bf16.msra.mxu0 %v2238_v4 }
  0x3b   : > { %v2221_v12 = vld [vmem:[%s3490_s27 + $0xc0] sm:$0xf]  ;;  %v2622_v13 = vor.u32 %v3088_v11, %v2621_v10  ;;  %v2988_v14 = vld [vmem:[%s3490_s27 + $0xcc] sm:$0xf0]  ;;  %1137 = vmatpush.bf16.msra.mxu1 %v2366_v8 }
  0x3c   : > { %v2349_v15 = vld [vmem:[%s3490_s27 + $0x1c0] sm:$0xf]  ;;  %v3020_v16 = vld [vmem:[%s3490_s27 + $0x1cc] sm:$0xf0]  ;;  %1150 = vmatpush.bf16.msra.mxu2 %v2494_v9  ;;  %v2222_v17 = vor.u32 %v2988_v14, %v2221_v12 }
  0x3d   : > { %v2350_v18 = vor.u32 %v3020_v16, %v2349_v15  ;;  %v2477_v19 = vld [vmem:[%s3490_s27 + $0x2c0] sm:$0xf]  ;;  %v3052_v20 = vld [vmem:[%s3490_s27 + $0x2cc] sm:$0xf0]  ;;  %1163 = vmatpush.bf16.msra.mxu3 %v2622_v13 }
  0x3e   : > { %v2605_v21 = vld [vmem:[%s3490_s27 + $0x3c0] sm:$0xf]  ;;  %v2478_v22 = vor.u32 %v3052_v20, %v2477_v19  ;;  %v3084_v23 = vld [vmem:[%s3490_s27 + $0x3cc] sm:$0xf0]  ;;  %1125 = vmatpush.bf16.msra.mxu0 %v2222_v17 }
  0x3f   : > { %v2205_v24 = vld [vmem:[%s3490_s27 + $0xa0] sm:$0xf]  ;;  %v2984_v25 = vld [vmem:[%s3490_s27 + $0xac] sm:$0xf0]  ;;  %v2606_v26 = vor.u32 %v3084_v23, %v2605_v21  ;;  %1138 = vmatpush.bf16.msra.mxu1 %v2350_v18 }
  0x40   : > { %v2333_v27 = vld [vmem:[%s3490_s27 + $0x1a0] sm:$0xf]  ;;  %v3016_v28 = vld [vmem:[%s3490_s27 + $0x1ac] sm:$0xf0]  ;;  %v2206_v30 = vor.u32 %v2984_v25, %v2205_v24  ;;  %1151 = vmatpush.bf16.msra.mxu2 %v2478_v22 }
  0x41   : > { %v2461_v29 = vld [vmem:[%s3490_s27 + $0x2a0] sm:$0xf]  ;;  %v3048_v31 = vld [vmem:[%s3490_s27 + $0x2ac] sm:$0xf0]  ;;  %v2334_v34 = vor.u32 %v3016_v28, %v2333_v27  ;;  %1164 = vmatpush.bf16.msra.mxu3 %v2606_v26 }
  0x42   : > { %v2589_v32 = vld [vmem:[%s3490_s27 + $0x3a0] sm:$0xf]  ;;  %v3080_v33 = vld [vmem:[%s3490_s27 + $0x3ac] sm:$0xf0]  ;;  %v2462_v35 = vor.u32 %v3048_v31, %v2461_v29  ;;  %1126 = vmatpush.bf16.msra.mxu0 %v2206_v30  ;;  %v2990_v29 = vld [vmem:[%s3490_s27 + $0xe4] sm:$0xf] }
  0x43   : > { %v2189_v36 = vld [vmem:[%s3490_s27 + $0x80] sm:$0xf]  ;;  %v2980_v37 = vld [vmem:[%s3490_s27 + $0x8c] sm:$0xf0]  ;;  %v2590_v39 = vor.u32 %v3080_v33, %v2589_v32  ;;  %1139 = vmatpush.bf16.msra.mxu1 %v2334_v34  ;;  %v2239_v30 = vld [vmem:[%s3490_s27 + $0xf0] sm:$0xf0] }
  0x44   : > { %v2317_v38 = vld [vmem:[%s3490_s27 + $0x180] sm:$0xf]  ;;  %v3012_v40 = vld [vmem:[%s3490_s27 + $0x18c] sm:$0xf0]  ;;  %v2190_v45 = vor.u32 %v2980_v37, %v2189_v36  ;;  %1152 = vmatpush.bf16.msra.mxu2 %v2462_v35  ;;  %v3022_v31 = vld [vmem:[%s3490_s27 + $0x1e4] sm:$0xf] }
  0x45   : > { %v2445_v41 = vld [vmem:[%s3490_s27 + $0x280] sm:$0xf]  ;;  %v3044_v42 = vld [vmem:[%s3490_s27 + $0x28c] sm:$0xf0]  ;;  %v2318_v46 = vor.u32 %v3012_v40, %v2317_v38  ;;  %1165 = vmatpush.bf16.msra.mxu3 %v2590_v39  ;;  %v2367_v33 = vld [vmem:[%s3490_s27 + $0x1f0] sm:$0xf0] }
  0x46   : > { %v2573_v43 = vld [vmem:[%s3490_s27 + $0x380] sm:$0xf]  ;;  %v3076_v44 = vld [vmem:[%s3490_s27 + $0x38c] sm:$0xf0]  ;;  %v2446_v47 = vor.u32 %v3044_v42, %v2445_v41  ;;  %1127 = vmatpush.bf16.msra.mxu0 %v2190_v45  ;;  %v3054_v34 = vld [vmem:[%s3490_s27 + $0x2e4] sm:$0xf]  ;;  %v2242_v41 = vor.u32 %v2990_v29, %v2239_v30  ;;  %v2370_v42 = vor.u32 %v3022_v31, %v2367_v33 }
  0x47   : > { %v2173_v48 = vld [vmem:[%s3490_s27 + $0x60] sm:$0xf]  ;;  %v2976_v49 = vld [vmem:[%s3490_s27 + $0x6c] sm:$0xf0]  ;;  %v2574_v51 = vor.u32 %v3076_v44, %v2573_v43  ;;  %1140 = vmatpush.bf16.msra.mxu1 %v2318_v46  ;;  %v2495_v35 = vld [vmem:[%s3490_s27 + $0x2f0] sm:$0xf0] }
  0x48   : > { %v2301_v50 = vld [vmem:[%s3490_s27 + $0x160] sm:$0xf]  ;;  %v3008_v52 = vld [vmem:[%s3490_s27 + $0x16c] sm:$0xf0]  ;;  %v2174_v57 = vor.u32 %v2976_v49, %v2173_v48  ;;  %1153 = vmatpush.bf16.msra.mxu2 %v2446_v47  ;;  %v3086_v38 = vld [vmem:[%s3490_s27 + $0x3e4] sm:$0xf]  ;;  %v2498_v43 = vor.u32 %v3054_v34, %v2495_v35 }
  0x49   : > { %v2429_v53 = vld [vmem:[%s3490_s27 + $0x260] sm:$0xf]  ;;  %v3040_v54 = vld [vmem:[%s3490_s27 + $0x26c] sm:$0xf0]  ;;  %v2302_v58 = vor.u32 %v3008_v52, %v2301_v50  ;;  %1166 = vmatpush.bf16.msra.mxu3 %v2574_v51  ;;  %v2623_v39 = vld [vmem:[%s3490_s27 + $0x3f0] sm:$0xf0] }
  0x4a   : > { %v2557_v55 = vld [vmem:[%s3490_s27 + $0x360] sm:$0xf]  ;;  %v3072_v56 = vld [vmem:[%s3490_s27 + $0x36c] sm:$0xf0]  ;;  %v2430_v59 = vor.u32 %v3040_v54, %v2429_v53  ;;  %1128 = vmatpush.bf16.msra.mxu0 %v2174_v57  ;;  %v2986_v44 = vld [vmem:[%s3490_s27 + $0xc4] sm:$0xf]  ;;  %v2626_v47 = vor.u32 %v3086_v38, %v2623_v39 }
  0x4b   : > { %v2157_v60 = vld [vmem:[%s3490_s27 + $0x40] sm:$0xf]  ;;  %v2972_v61 = vld [vmem:[%s3490_s27 + $0x4c] sm:$0xf0]  ;;  %v2558_v63 = vor.u32 %v3072_v56, %v2557_v55  ;;  %1141 = vmatpush.bf16.msra.mxu1 %v2302_v58  ;;  %v2223_v45 = vld [vmem:[%s3490_s27 + $0xd0] sm:$0xf0] }
  0x4c   : > { %v2285_v62 = vld [vmem:[%s3490_s27 + $0x140] sm:$0xf]  ;;  %v3004_v0 = vld [vmem:[%s3490_s27 + $0x14c] sm:$0xf0]  ;;  %v2158_v5 = vor.u32 %v2972_v61, %v2157_v60  ;;  %1154 = vmatpush.bf16.msra.mxu2 %v2430_v59  ;;  %v3018_v46 = vld [vmem:[%s3490_s27 + $0x1c4] sm:$0xf]  ;;  %v2226_v53 = vor.u32 %v2986_v44, %v2223_v45 }
  0x4d   : > { %v2413_v1 = vld [vmem:[%s3490_s27 + $0x240] sm:$0xf]  ;;  %v3036_v2 = vld [vmem:[%s3490_s27 + $0x24c] sm:$0xf0]  ;;  %v2286_v6 = vor.u32 %v3004_v0, %v2285_v62  ;;  %1167 = vmatpush.bf16.msra.mxu3 %v2558_v63  ;;  %v2351_v48 = vld [vmem:[%s3490_s27 + $0x1d0] sm:$0xf0] }
  0x4e   : > { %v2541_v3 = vld [vmem:[%s3490_s27 + $0x340] sm:$0xf]  ;;  %v3068_v4 = vld [vmem:[%s3490_s27 + $0x34c] sm:$0xf0]  ;;  %v2414_v7 = vor.u32 %v3036_v2, %v2413_v1  ;;  %1129 = vmatpush.bf16.msra.mxu0 %v2158_v5  ;;  %v3050_v49 = vld [vmem:[%s3490_s27 + $0x2c4] sm:$0xf]  ;;  %v2354_v54 = vor.u32 %v3018_v46, %v2351_v48 }
  0x4f   : > { %v2141_v8 = vld [vmem:[%s3490_s27 + $0x20] sm:$0xf]  ;;  %v2968_v9 = vld [vmem:[%s3490_s27 + $0x2c] sm:$0xf0]  ;;  %v2542_v11 = vor.u32 %v3068_v4, %v2541_v3  ;;  %1142 = vmatpush.bf16.msra.mxu1 %v2286_v6  ;;  %v2479_v50 = vld [vmem:[%s3490_s27 + $0x2d0] sm:$0xf0] }
  0x50   : > { %v2269_v10 = vld [vmem:[%s3490_s27 + $0x120] sm:$0xf]  ;;  %v3000_v12 = vld [vmem:[%s3490_s27 + $0x12c] sm:$0xf0]  ;;  %v2142_v17 = vor.u32 %v2968_v9, %v2141_v8  ;;  %1155 = vmatpush.bf16.msra.mxu2 %v2414_v7  ;;  %v3082_v51 = vld [vmem:[%s3490_s27 + $0x3c4] sm:$0xf]  ;;  %v2482_v55 = vor.u32 %v3050_v49, %v2479_v50 }
  0x51   : > { %v2397_v13 = vld [vmem:[%s3490_s27 + $0x220] sm:$0xf]  ;;  %v3032_v14 = vld [vmem:[%s3490_s27 + $0x22c] sm:$0xf0]  ;;  %v2270_v20 = vor.u32 %v3000_v12, %v2269_v10  ;;  %1168 = vmatpush.bf16.msra.mxu3 %v2542_v11  ;;  %v2607_v52 = vld [vmem:[%s3490_s27 + $0x3d0] sm:$0xf0] }
  0x52   : > { %v2525_v15 = vld [vmem:[%s3490_s27 + $0x320] sm:$0xf]  ;;  %v3064_v16 = vld [vmem:[%s3490_s27 + $0x32c] sm:$0xf0]  ;;  %v2398_v21 = vor.u32 %v3032_v14, %v2397_v13  ;;  %1130 = vmatpush.bf16.msra.mxu0 %v2142_v17  ;;  %v2982_v56 = vld [vmem:[%s3490_s27 + $0xa4] sm:$0xf]  ;;  %v2610_v59 = vor.u32 %v3082_v51, %v2607_v52 }
  0x53   : > { %v2125_v18 = vld [vmem:[%s3490_s27] sm:$0xf]  ;;  %v2964_v19 = vld [vmem:[%s3490_s27 + $0xc] sm:$0xf0]  ;;  %v2526_v25 = vor.u32 %v3064_v16, %v2525_v15  ;;  %1143 = vmatpush.bf16.msra.mxu1 %v2270_v20  ;;  %v2207_v57 = vld [vmem:[%s3490_s27 + $0xb0] sm:$0xf0] }
  0x54   : > { %v2253_v22 = vld [vmem:[%s3490_s27 + $0x100] sm:$0xf]  ;;  %v2996_v23 = vld [vmem:[%s3490_s27 + $0x10c] sm:$0xf0]  ;;  %v2126_v32 = vor.u32 %v2964_v19, %v2125_v18  ;;  %1156 = vmatpush.bf16.msra.mxu2 %v2398_v21  ;;  %v3014_v58 = vld [vmem:[%s3490_s27 + $0x1a4] sm:$0xf]  ;;  %v2210_v1 = vor.u32 %v2982_v56, %v2207_v57 }
  0x55   : > { %v2381_v24 = vld [vmem:[%s3490_s27 + $0x200] sm:$0xf]  ;;  %v3028_v26 = vld [vmem:[%s3490_s27 + $0x20c] sm:$0xf0]  ;;  %v2254_v36 = vor.u32 %v2996_v23, %v2253_v22  ;;  %1169 = vmatpush.bf16.msra.mxu3 %v2526_v25  ;;  %v2335_v60 = vld [vmem:[%s3490_s27 + $0x1b0] sm:$0xf0] }
  0x56   : > { %v2509_v27 = vld [vmem:[%s3490_s27 + $0x300] sm:$0xf]  ;;  %v3060_v28 = vld [vmem:[%s3490_s27 + $0x30c] sm:$0xf0]  ;;  %v2382_v37 = vor.u32 %v3028_v26, %v2381_v24  ;;  %1131 = vmatpush.bf16.msra.mxu0 %v2126_v32  ;;  %v3046_v61 = vld [vmem:[%s3490_s27 + $0x2a4] sm:$0xf]  ;;  %v2338_v3 = vor.u32 %v3014_v58, %v2335_v60 }
  0x57   : > { %v2510_v40 = vor.u32 %v3060_v28, %v2509_v27  ;;  %1144 = vmatpush.bf16.msra.mxu1 %v2254_v36  ;;  %v2463_v62 = vld [vmem:[%s3490_s27 + $0x2b0] sm:$0xf0]  ;;  %v3078_v63 = vld [vmem:[%s3490_s27 + $0x3a4] sm:$0xf]  ;;  %v341_v2 = vld [vmem:[%s3504_s12 + $0x8] sm:$0xff] }
  0x58   : > { %1157 = vmatpush.bf16.msra.mxu2 %v2382_v37  ;;  %v2591_v0 = vld [vmem:[%s3490_s27 + $0x3b0] sm:$0xf0]  ;;  %v2466_v4 = vor.u32 %v3046_v61, %v2463_v62  ;;  %v2978_v5 = vld [vmem:[%s3490_s27 + $0x84] sm:$0xf]  ;;  %v474_v8 = vunpack.c.l.b16 %v341_v2  ;;  %v475_v9 = vunpack.c.h.b16 %v341_v2 }
  0x59   : > { %1170 = vmatpush.bf16.msra.mxu3 %v2510_v40  ;;  %v2191_v6 = vld [vmem:[%s3490_s27 + $0x90] sm:$0xf0]  ;;  %v3010_v7 = vld [vmem:[%s3490_s27 + $0x184] sm:$0xf]  ;;  %v2594_v10 = vor.u32 %v3078_v63, %v2591_v0 }
  0x5a   : > { %1176 = vmatpush.bf16.msrb.mxu0 %v2242_v41  ;;  %v2319_v11 = vld [vmem:[%s3490_s27 + $0x190] sm:$0xf0]  ;;  %v3042_v12 = vld [vmem:[%s3490_s27 + $0x284] sm:$0xf]  ;;  %v3605_v16 = vpack.c.b16 %v474_v8, %v474_v8  ;;  %v3607_v17 = vpack.c.b16 %v475_v9, %v475_v9  ;;  %v2194_v19 = vor.u32 %v2978_v5, %v2191_v6  ;;  %v2993_v8 = vld [vmem:[%s3490_s27 + $0xf4] sm:$0xf0] }
  0x5b   : > { %1189 = vmatpush.bf16.msrb.mxu1 %v2370_v42  ;;  %v2447_v13 = vld [vmem:[%s3490_s27 + $0x290] sm:$0xf0]  ;;  %v3074_v14 = vld [vmem:[%s3490_s27 + $0x384] sm:$0xf]  ;;  %v2322_v22 = vor.u32 %v3010_v7, %v2319_v11  ;;  %v2245_v7 = vld [vmem:[%s3490_s27 + $0xe8] sm:$0xf] }
  0x5c   : > { %1202 = vmatpush.bf16.msrb.mxu2 %v2498_v43  ;;  %v2575_v15 = vld [vmem:[%s3490_s27 + $0x390] sm:$0xf0]  ;;  %v340_v18 = vld [vmem:[%s3504_s12] sm:$0xff]  ;;  %v2450_v23 = vor.u32 %v3042_v12, %v2447_v13  ;;  %1171 = vmatmul.bf16.vlgmr.msra.gmra.mxu3 %v3607_v17  ;;  %v2373_v9 = vld [vmem:[%s3490_s27 + $0x1e8] sm:$0xf] }
  0x5d   : > { %1215 = vmatpush.bf16.msrb.mxu3 %v2626_v47  ;;  %v472_v20 = vunpack.c.l.b16 %v340_v18  ;;  %v473_v21 = vunpack.c.h.b16 %v340_v18  ;;  %v2974_v24 = vld [vmem:[%s3490_s27 + $0x64] sm:$0xf]  ;;  %v2175_v25 = vld [vmem:[%s3490_s27 + $0x70] sm:$0xf0]  ;;  %v2578_v27 = vor.u32 %v3074_v14, %v2575_v15  ;;  %1158 = vmatmul.bf16.vlgmr.msra.gmra.mxu2 %v3605_v16  ;;  %v3025_v11 = vld [vmem:[%s3490_s27 + $0x1f4] sm:$0xf0] }
  0x5e   : > { %1177 = vmatpush.bf16.msrb.mxu0 %v2226_v53  ;;  %v3006_v26 = vld [vmem:[%s3490_s27 + $0x164] sm:$0xf]  ;;  %v2303_v28 = vld [vmem:[%s3490_s27 + $0x170] sm:$0xf0]  ;;  %v2178_v35 = vor.u32 %v2974_v24, %v2175_v25  ;;  %v2501_v12 = vld [vmem:[%s3490_s27 + $0x2e8] sm:$0xf] }
  0x5f   : > { %1190 = vmatpush.bf16.msrb.mxu1 %v2354_v54  ;;  %v3038_v29 = vld [vmem:[%s3490_s27 + $0x264] sm:$0xf]  ;;  %v2431_v30 = vld [vmem:[%s3490_s27 + $0x270] sm:$0xf0]  ;;  %v3617_v31 = vpack.c.b16 %v472_v20, %v472_v20  ;;  %v3619_v32 = vpack.c.b16 %v473_v21, %v473_v21  ;;  %v2306_v36 = vor.u32 %v3006_v26, %v2303_v28  ;;  %v3057_v13 = vld [vmem:[%s3490_s27 + $0x2f4] sm:$0xf0]  ;;  %v2246_v21 = vor.u32 %v2993_v8, %v2245_v7 }
  0x60   : > { %1203 = vmatpush.bf16.msrb.mxu2 %v2482_v55  ;;  %v3070_v33 = vld [vmem:[%s3490_s27 + $0x364] sm:$0xf]  ;;  %v2559_v34 = vld [vmem:[%s3490_s27 + $0x370] sm:$0xf0]  ;;  %v2434_v37 = vor.u32 %v3038_v29, %v2431_v30  ;;  %v2629_v18 = vld [vmem:[%s3490_s27 + $0x3e8] sm:$0xf] }
  0x61   : > { %1216 = vmatpush.bf16.msrb.mxu3 %v2610_v59  ;;  %1145 = vmatmul.bf16.vlgmr.msra.gmra.mxu1 %v3619_v32  ;;  %v2970_v38 = vld [vmem:[%s3490_s27 + $0x44] sm:$0xf]  ;;  %v2159_v39 = vld [vmem:[%s3490_s27 + $0x50] sm:$0xf0]  ;;  %v2562_v41 = vor.u32 %v3070_v33, %v2559_v34  ;;  %v2229_v24 = vld [vmem:[%s3490_s27 + $0xc8] sm:$0xf] }
  0x62   : > { %1178 = vmatpush.bf16.msrb.mxu0 %v2210_v1  ;;  %v3002_v40 = vld [vmem:[%s3490_s27 + $0x144] sm:$0xf]  ;;  %v2287_v42 = vld [vmem:[%s3490_s27 + $0x150] sm:$0xf0]  ;;  %v2162_v47 = vor.u32 %v2970_v38, %v2159_v39  ;;  %v2989_v25 = vld [vmem:[%s3490_s27 + $0xd4] sm:$0xf0] }
  0x63   : > { %1191 = vmatpush.bf16.msrb.mxu1 %v2338_v3  ;;  %v3034_v43 = vld [vmem:[%s3490_s27 + $0x244] sm:$0xf]  ;;  %v2415_v44 = vld [vmem:[%s3490_s27 + $0x250] sm:$0xf0]  ;;  %1132 = vmatmul.bf16.vlgmr.msra.gmra.mxu0 %v3617_v31  ;;  %v2290_v48 = vor.u32 %v3002_v40, %v2287_v42  ;;  %v2357_v26 = vld [vmem:[%s3490_s27 + $0x1c8] sm:$0xf] }
  0x64   : > { %1204 = vmatpush.bf16.msrb.mxu2 %v2466_v4  ;;  %v3066_v45 = vld [vmem:[%s3490_s27 + $0x344] sm:$0xf]  ;;  %v2543_v46 = vld [vmem:[%s3490_s27 + $0x350] sm:$0xf0]  ;;  %v2418_v49 = vor.u32 %v3034_v43, %v2415_v44  ;;  %v3021_v28 = vld [vmem:[%s3490_s27 + $0x1d4] sm:$0xf0] }
  0x65   : > { %1217 = vmatpush.bf16.msrb.mxu3 %v2594_v10  ;;  %v2966_v50 = vld [vmem:[%s3490_s27 + $0x24] sm:$0xf]  ;;  %v2143_v51 = vld [vmem:[%s3490_s27 + $0x30] sm:$0xf0]  ;;  %v2546_v53 = vor.u32 %v3066_v45, %v2543_v46  ;;  %v2485_v29 = vld [vmem:[%s3490_s27 + $0x2c8] sm:$0xf] }
  0x66   : > { %1179 = vmatpush.bf16.msrb.mxu0 %v2194_v19  ;;  %v2998_v52 = vld [vmem:[%s3490_s27 + $0x124] sm:$0xf]  ;;  %v2271_v54 = vld [vmem:[%s3490_s27 + $0x130] sm:$0xf0]  ;;  %v2146_v59 = vor.u32 %v2966_v50, %v2143_v51  ;;  %v3089_v19 = vld [vmem:[%s3490_s27 + $0x3f4] sm:$0xf0] }
  0x67   : > { %1192 = vmatpush.bf16.msrb.mxu1 %v2322_v22  ;;  %v3030_v55 = vld [vmem:[%s3490_s27 + $0x224] sm:$0xf]  ;;  %v2399_v56 = vld [vmem:[%s3490_s27 + $0x230] sm:$0xf0]  ;;  %v2274_v62 = vor.u32 %v2998_v52, %v2271_v54  ;;  %v2374_v22 = vor.u32 %v3025_v11, %v2373_v9  ;;  %v3053_v30 = vld [vmem:[%s3490_s27 + $0x2d4] sm:$0xf0] }
  0x68   : > { %1205 = vmatpush.bf16.msrb.mxu2 %v2450_v23  ;;  %v3062_v57 = vld [vmem:[%s3490_s27 + $0x324] sm:$0xf]  ;;  %v2527_v58 = vld [vmem:[%s3490_s27 + $0x330] sm:$0xf0]  ;;  %v2402_v63 = vor.u32 %v3030_v55, %v2399_v56  ;;  %v2502_v23 = vor.u32 %v3057_v13, %v2501_v12  ;;  %v2613_v33 = vld [vmem:[%s3490_s27 + $0x3c8] sm:$0xf] }
  0x69   : > { %1218 = vmatpush.bf16.msrb.mxu3 %v2578_v27  ;;  %v2962_v60 = vld [vmem:[%s3490_s27 + $0x4] sm:$0xf]  ;;  %v2127_v61 = vld [vmem:[%s3490_s27 + $0x10] sm:$0xf0]  ;;  %v2530_v3 = vor.u32 %v3062_v57, %v2527_v58  ;;  %v2630_v27 = vor.u32 %v3089_v19, %v2629_v18  ;;  %v3085_v34 = vld [vmem:[%s3490_s27 + $0x3d4] sm:$0xf0] }
  0x6a   : > { %1180 = vmatpush.bf16.msrb.mxu0 %v2178_v35  ;;  %v2994_v0 = vld [vmem:[%s3490_s27 + $0x104] sm:$0xf]  ;;  %v2255_v1 = vld [vmem:[%s3490_s27 + $0x110] sm:$0xf0]  ;;  %v2130_v10 = vor.u32 %v2962_v60, %v2127_v61  ;;  %v2230_v35 = vor.u32 %v2989_v25, %v2229_v24  ;;  %v2213_v38 = vld [vmem:[%s3490_s27 + $0xa8] sm:$0xf] }
  0x6b   : > { %1193 = vmatpush.bf16.msrb.mxu1 %v2306_v36  ;;  %v3026_v2 = vld [vmem:[%s3490_s27 + $0x204] sm:$0xf]  ;;  %v2383_v4 = vld [vmem:[%s3490_s27 + $0x210] sm:$0xf0]  ;;  %v2258_v14 = vor.u32 %v2994_v0, %v2255_v1  ;;  %v2358_v36 = vor.u32 %v3021_v28, %v2357_v26  ;;  %v2985_v39 = vld [vmem:[%s3490_s27 + $0xb4] sm:$0xf0] }
  0x6c   : > { %1206 = vmatpush.bf16.msrb.mxu2 %v2434_v37  ;;  %v3058_v5 = vld [vmem:[%s3490_s27 + $0x304] sm:$0xf]  ;;  %v2511_v6 = vld [vmem:[%s3490_s27 + $0x310] sm:$0xf0]  ;;  %v2386_v15 = vor.u32 %v3026_v2, %v2383_v4  ;;  %v2486_v37 = vor.u32 %v3053_v30, %v2485_v29  ;;  %v2341_v40 = vld [vmem:[%s3490_s27 + $0x1a8] sm:$0xf] }
  0x6d   : > { %1219 = vmatpush.bf16.msrb.mxu3 %v2562_v41  ;;  %v2514_v20 = vor.u32 %v3058_v5, %v2511_v6  ;;  %v2614_v41 = vor.u32 %v3085_v34, %v2613_v33  ;;  %v3017_v42 = vld [vmem:[%s3490_s27 + $0x1b4] sm:$0xf0]  ;;  %v2469_v43 = vld [vmem:[%s3490_s27 + $0x2a8] sm:$0xf] }
  0x6e   : > { %1181 = vmatpush.bf16.msrb.mxu0 %v2162_v47  ;;  %v3049_v44 = vld [vmem:[%s3490_s27 + $0x2b4] sm:$0xf0]  ;;  %v2597_v45 = vld [vmem:[%s3490_s27 + $0x3a8] sm:$0xf]  ;;  %v2214_v47 = vor.u32 %v2985_v39, %v2213_v38 }
  0x6f   : > { %1194 = vmatpush.bf16.msrb.mxu1 %v2290_v48  ;;  %v3081_v46 = vld [vmem:[%s3490_s27 + $0x3b4] sm:$0xf0]  ;;  %v2342_v48 = vor.u32 %v3017_v42, %v2341_v40  ;;  %v2197_v50 = vld [vmem:[%s3490_s27 + $0x88] sm:$0xf] }
  0x70   : > { %1207 = vmatpush.bf16.msrb.mxu2 %v2418_v49  ;;  %v2470_v49 = vor.u32 %v3049_v44, %v2469_v43  ;;  %v2981_v51 = vld [vmem:[%s3490_s27 + $0x94] sm:$0xf0]  ;;  %v2325_v52 = vld [vmem:[%s3490_s27 + $0x188] sm:$0xf] }
  0x71   : > { %1220 = vmatpush.bf16.msrb.mxu3 %v2546_v53  ;;  %v2598_v53 = vor.u32 %v3081_v46, %v2597_v45  ;;  %v3013_v54 = vld [vmem:[%s3490_s27 + $0x194] sm:$0xf0]  ;;  %v2453_v55 = vld [vmem:[%s3490_s27 + $0x288] sm:$0xf] }
  0x72   : > { %1182 = vmatpush.bf16.msrb.mxu0 %v2146_v59  ;;  %v3045_v56 = vld [vmem:[%s3490_s27 + $0x294] sm:$0xf0]  ;;  %v2581_v57 = vld [vmem:[%s3490_s27 + $0x388] sm:$0xf]  ;;  %v2198_v59 = vor.u32 %v2981_v51, %v2197_v50  ;;  %v2326_v60 = vor.u32 %v3013_v54, %v2325_v52  ;;  %v2375_v51 = vld [vmem:[%s3490_s27 + $0x1f8] sm:$0xf0] }
  0x73   : > { %1195 = vmatpush.bf16.msrb.mxu1 %v2274_v62  ;;  %v3077_v58 = vld [vmem:[%s3490_s27 + $0x394] sm:$0xf0]  ;;  %v2454_v61 = vor.u32 %v3045_v56, %v2453_v55  ;;  %v2181_v62 = vld [vmem:[%s3490_s27 + $0x68] sm:$0xf]  ;;  %v3055_v52 = vld [vmem:[%s3490_s27 + $0x2ec] sm:$0xf] }
  0x74   : > { %1208 = vmatpush.bf16.msrb.mxu2 %v2402_v63  ;;  %v2977_v63 = vld [vmem:[%s3490_s27 + $0x74] sm:$0xf0]  ;;  %v2309_v0 = vld [vmem:[%s3490_s27 + $0x168] sm:$0xf]  ;;  %v2582_v1 = vor.u32 %v3077_v58, %v2581_v57  ;;  %v3087_v56 = vld [vmem:[%s3490_s27 + $0x3ec] sm:$0xf] }
  0x75   : > { %1221 = vmatpush.bf16.msrb.mxu3 %v2530_v3  ;;  %v3009_v2 = vld [vmem:[%s3490_s27 + $0x174] sm:$0xf0]  ;;  %v2437_v3 = vld [vmem:[%s3490_s27 + $0x268] sm:$0xf]  ;;  %v2182_v7 = vor.u32 %v2977_v63, %v2181_v62  ;;  %v2631_v57 = vld [vmem:[%s3490_s27 + $0x3f8] sm:$0xf0] }
  0x76   : > { %1183 = vmatpush.bf16.msrb.mxu0 %v2130_v10  ;;  %v3041_v4 = vld [vmem:[%s3490_s27 + $0x274] sm:$0xf0]  ;;  %v2565_v5 = vld [vmem:[%s3490_s27 + $0x368] sm:$0xf]  ;;  %v2310_v8 = vor.u32 %v3009_v2, %v2309_v0  ;;  %v2987_v62 = vld [vmem:[%s3490_s27 + $0xcc] sm:$0xf] }
  0x77   : > { %1196 = vmatpush.bf16.msrb.mxu1 %v2258_v14  ;;  %v3073_v6 = vld [vmem:[%s3490_s27 + $0x374] sm:$0xf0]  ;;  %v2438_v9 = vor.u32 %v3041_v4, %v2437_v3  ;;  %v2165_v10 = vld [vmem:[%s3490_s27 + $0x48] sm:$0xf]  ;;  %v2231_v63 = vld [vmem:[%s3490_s27 + $0xd8] sm:$0xf0] }
  0x78   : > { %1209 = vmatpush.bf16.msrb.mxu2 %v2386_v15  ;;  %v2973_v11 = vld [vmem:[%s3490_s27 + $0x54] sm:$0xf0]  ;;  %v2293_v12 = vld [vmem:[%s3490_s27 + $0x148] sm:$0xf]  ;;  %v2566_v13 = vor.u32 %v3073_v6, %v2565_v5  ;;  %v3019_v0 = vld [vmem:[%s3490_s27 + $0x1cc] sm:$0xf] }
  0x79   : > { %1222 = vmatpush.bf16.msrb.mxu3 %v2514_v20  ;;  %1184 = vmatmul.bf16.vlgmr.msrb.gmra.mxu0 %v3617_v31  ;;  %v3005_v14 = vld [vmem:[%s3490_s27 + $0x154] sm:$0xf0]  ;;  %v2421_v15 = vld [vmem:[%s3490_s27 + $0x248] sm:$0xf]  ;;  %v2359_v2 = vld [vmem:[%s3490_s27 + $0x1d8] sm:$0xf0] }
  0x7a   : > { %1228 = vmatpush.bf16.msra.mxu0 %v2246_v21  ;;  %1197 = vmatmul.bf16.vlgmr.msrb.gmra.mxu1 %v3619_v32  ;;  %v3037_v18 = vld [vmem:[%s3490_s27 + $0x254] sm:$0xf0]  ;;  %v2549_v19 = vld [vmem:[%s3490_s27 + $0x348] sm:$0xf]  ;;  %v2166_v21 = vor.u32 %v2973_v11, %v2165_v10  ;;  %v3051_v3 = vld [vmem:[%s3490_s27 + $0x2cc] sm:$0xf] }
  0x7b   : > { %1241 = vmatpush.bf16.msra.mxu1 %v2374_v22  ;;  %1210 = vmatmul.bf16.vlgmr.msrb.gmra.mxu2 %v3605_v16  ;;  %v3069_v20 = vld [vmem:[%s3490_s27 + $0x354] sm:$0xf0]  ;;  %v2294_v22 = vor.u32 %v3005_v14, %v2293_v12  ;;  %v2149_v24 = vld [vmem:[%s3490_s27 + $0x28] sm:$0xf]  ;;  %v2487_v4 = vld [vmem:[%s3490_s27 + $0x2d8] sm:$0xf0] }
  0x7c   : > { %1254 = vmatpush.bf16.msra.mxu2 %v2502_v23  ;;  %1223 = vmatmul.bf16.vlgmr.msrb.gmra.mxu3 %v3607_v17  ;;  %v2422_v23 = vor.u32 %v3037_v18, %v2421_v15  ;;  %v2969_v25 = vld [vmem:[%s3490_s27 + $0x34] sm:$0xf0]  ;;  %v2277_v26 = vld [vmem:[%s3490_s27 + $0x128] sm:$0xf]  ;;  %v3083_v5 = vld [vmem:[%s3490_s27 + $0x3cc] sm:$0xf] }
  0x7d   : > { %1267 = vmatpush.bf16.msra.mxu3 %v2630_v27  ;;  %v2550_v27 = vor.u32 %v3069_v20, %v2549_v19  ;;  %v3001_v28 = vld [vmem:[%s3490_s27 + $0x134] sm:$0xf0]  ;;  %v2405_v29 = vld [vmem:[%s3490_s27 + $0x228] sm:$0xf]  ;;  %v2615_v6 = vld [vmem:[%s3490_s27 + $0x3d8] sm:$0xf0] }
  0x7e   : > { %1229 = vmatpush.bf16.msra.mxu0 %v2230_v35  ;;  %v3033_v30 = vld [vmem:[%s3490_s27 + $0x234] sm:$0xf0]  ;;  %v2533_v33 = vld [vmem:[%s3490_s27 + $0x328] sm:$0xf]  ;;  %v2150_v35 = vor.u32 %v2969_v25, %v2149_v24  ;;  %v2278_v38 = vor.u32 %v3001_v28, %v2277_v26  ;;  %v2983_v10 = vld [vmem:[%s3490_s27 + $0xac] sm:$0xf] }
  0x7f   : > { %1242 = vmatpush.bf16.msra.mxu1 %v2358_v36  ;;  %v3065_v34 = vld [vmem:[%s3490_s27 + $0x334] sm:$0xf0]  ;;  %v2133_v36 = vld [vmem:[%s3490_s27 + $0x8] sm:$0xf]  ;;  %v2406_v39 = vor.u32 %v3033_v30, %v2405_v29  ;;  %v2215_v11 = vld [vmem:[%s3490_s27 + $0xb8] sm:$0xf0] }
  0x80   : > { %1255 = vmatpush.bf16.msra.mxu2 %v2486_v37  ;;  %v2965_v37 = vld [vmem:[%s3490_s27 + $0x14] sm:$0xf0]  ;;  %v2261_v40 = vld [vmem:[%s3490_s27 + $0x108] sm:$0xf]  ;;  %v2534_v43 = vor.u32 %v3065_v34, %v2533_v33  ;;  %v3015_v12 = vld [vmem:[%s3490_s27 + $0x1ac] sm:$0xf] }
  0x81   : > { %1268 = vmatpush.bf16.msra.mxu3 %v2614_v41  ;;  %v2997_v41 = vld [vmem:[%s3490_s27 + $0x114] sm:$0xf0]  ;;  %v2389_v42 = vld [vmem:[%s3490_s27 + $0x208] sm:$0xf]  ;;  %v2134_v50 = vor.u32 %v2965_v37, %v2133_v36  ;;  %v2343_v14 = vld [vmem:[%s3490_s27 + $0x1b8] sm:$0xf0] }
  0x82   : > { %1230 = vmatpush.bf16.msra.mxu0 %v2214_v47  ;;  %v3029_v44 = vld [vmem:[%s3490_s27 + $0x214] sm:$0xf0]  ;;  %v2517_v45 = vld [vmem:[%s3490_s27 + $0x308] sm:$0xf]  ;;  %v2991_v47 = vld [vmem:[%s3490_s27 + $0xec] sm:$0xf]  ;;  %v2262_v54 = vor.u32 %v2997_v41, %v2261_v40 }
  0x83   : > { %1243 = vmatpush.bf16.msra.mxu1 %v2342_v48  ;;  %v3061_v46 = vld [vmem:[%s3490_s27 + $0x314] sm:$0xf0]  ;;  %v2247_v48 = vld [vmem:[%s3490_s27 + $0xf8] sm:$0xf0]  ;;  %v2390_v55 = vor.u32 %v3029_v44, %v2389_v42  ;;  %v3047_v15 = vld [vmem:[%s3490_s27 + $0x2ac] sm:$0xf] }
  0x84   : > { %1256 = vmatpush.bf16.msra.mxu2 %v2470_v49  ;;  %v3023_v49 = vld [vmem:[%s3490_s27 + $0x1ec] sm:$0xf]  ;;  %v2518_v58 = vor.u32 %v3061_v46, %v2517_v45  ;;  %v2471_v18 = vld [vmem:[%s3490_s27 + $0x2b8] sm:$0xf0] }
  0x85   : > { %1269 = vmatpush.bf16.msra.mxu3 %v2598_v53  ;;  %v2503_v53 = vld [vmem:[%s3490_s27 + $0x2f8] sm:$0xf0]  ;;  %v3079_v19 = vld [vmem:[%s3490_s27 + $0x3ac] sm:$0xf] }
  0x86   : > { %1231 = vmatpush.bf16.msra.mxu0 %v2198_v59  ;;  %v2250_v59 = vor.u32 %v2991_v47, %v2247_v48  ;;  %v2599_v20 = vld [vmem:[%s3490_s27 + $0x3b8] sm:$0xf0]  ;;  %v2979_v24 = vld [vmem:[%s3490_s27 + $0x8c] sm:$0xf] }
  0x87   : > { %1244 = vmatpush.bf16.msra.mxu1 %v2326_v60  ;;  %v2378_v60 = vor.u32 %v3023_v49, %v2375_v51  ;;  %v2199_v25 = vld [vmem:[%s3490_s27 + $0x98] sm:$0xf0]  ;;  %v3011_v26 = vld [vmem:[%s3490_s27 + $0x18c] sm:$0xf] }
  0x88   : > { %1257 = vmatpush.bf16.msra.mxu2 %v2454_v61  ;;  %v2506_v61 = vor.u32 %v3055_v52, %v2503_v53  ;;  %v2327_v28 = vld [vmem:[%s3490_s27 + $0x198] sm:$0xf0]  ;;  %v3043_v29 = vld [vmem:[%s3490_s27 + $0x28c] sm:$0xf] }
  0x89   : > { %1270 = vmatpush.bf16.msra.mxu3 %v2582_v1  ;;  %v2634_v1 = vor.u32 %v3087_v56, %v2631_v57  ;;  %v2455_v30 = vld [vmem:[%s3490_s27 + $0x298] sm:$0xf0]  ;;  %v3075_v33 = vld [vmem:[%s3490_s27 + $0x38c] sm:$0xf]  ;;  %v2330_v36 = vor.u32 %v3011_v26, %v2327_v28 }
  0x8a   : > { %1232 = vmatpush.bf16.msra.mxu0 %v2182_v7  ;;  %v2234_v7 = vor.u32 %v2987_v62, %v2231_v63  ;;  %v2583_v34 = vld [vmem:[%s3490_s27 + $0x398] sm:$0xf0]  ;;  %v2458_v37 = vor.u32 %v3043_v29, %v2455_v30  ;;  %v3007_v40 = vld [vmem:[%s3490_s27 + $0x16c] sm:$0xf] }
  0x8b   : > { %1245 = vmatpush.bf16.msra.mxu1 %v2310_v8  ;;  %v2362_v8 = vor.u32 %v3019_v0, %v2359_v2  ;;  %v2586_v41 = vor.u32 %v3075_v33, %v2583_v34  ;;  %v2311_v42 = vld [vmem:[%s3490_s27 + $0x178] sm:$0xf0]  ;;  %v3071_v45 = vld [vmem:[%s3490_s27 + $0x36c] sm:$0xf]  ;;  %v336_v33 = vld [vmem:[#allocation2 + $0x10] sm:$0xff] }
  0x8c   : > { %1258 = vmatpush.bf16.msra.mxu2 %v2438_v9  ;;  %v2490_v9 = vor.u32 %v3051_v3, %v2487_v4  ;;  %v2439_v44 = vld [vmem:[%s3490_s27 + $0x278] sm:$0xf0]  ;;  %v2314_v48 = vor.u32 %v3007_v40, %v2311_v42  ;;  %v3003_v52 = vld [vmem:[%s3490_s27 + $0x14c] sm:$0xf]  ;;  %v337_v42 = vld [vmem:[#allocation2] sm:$0xff] }
  0x8d   : > { %1271 = vmatpush.bf16.msra.mxu3 %v2566_v13  ;;  %v2618_v13 = vor.u32 %v3083_v5, %v2615_v6  ;;  %v2567_v46 = vld [vmem:[%s3490_s27 + $0x378] sm:$0xf0]  ;;  %v3067_v57 = vld [vmem:[%s3490_s27 + $0x34c] sm:$0xf] }
  0x8e   : > { %1233 = vmatpush.bf16.msra.mxu0 %v2166_v21  ;;  %v2218_v21 = vor.u32 %v2983_v10, %v2215_v11  ;;  %v2167_v51 = vld [vmem:[%s3490_s27 + $0x58] sm:$0xf0]  ;;  %v2570_v53 = vor.u32 %v3071_v45, %v2567_v46  ;;  %v2967_v62 = vld [vmem:[%s3490_s27 + $0x2c] sm:$0xf] }
  0x8f   : > { %1246 = vmatpush.bf16.msra.mxu1 %v2294_v22  ;;  %v2346_v22 = vor.u32 %v3015_v12, %v2343_v14  ;;  %v2423_v56 = vld [vmem:[%s3490_s27 + $0x258] sm:$0xf0]  ;;  %v2999_v0 = vld [vmem:[%s3490_s27 + $0x12c] sm:$0xf] }
  0x90   : > { %1259 = vmatpush.bf16.msra.mxu2 %v2422_v23  ;;  %v2474_v23 = vor.u32 %v3047_v15, %v2471_v18  ;;  %v2151_v63 = vld [vmem:[%s3490_s27 + $0x38] sm:$0xf0]  ;;  %v3031_v3 = vld [vmem:[%s3490_s27 + $0x22c] sm:$0xf] }
  0x91   : > { %1272 = vmatpush.bf16.msra.mxu3 %v2550_v27  ;;  %v2602_v27 = vor.u32 %v3079_v19, %v2599_v20  ;;  %v2279_v2 = vld [vmem:[%s3490_s27 + $0x138] sm:$0xf0]  ;;  %v3063_v5 = vld [vmem:[%s3490_s27 + $0x32c] sm:$0xf] }
  0x92   : > { %1234 = vmatpush.bf16.msra.mxu0 %v2150_v35  ;;  %v2202_v35 = vor.u32 %v2979_v24, %v2199_v25  ;;  %v2407_v4 = vld [vmem:[%s3490_s27 + $0x238] sm:$0xf0]  ;;  %v2963_v10 = vld [vmem:[%s3490_s27 + $0xc] sm:$0xf] }
  0x93   : > { %1247 = vmatpush.bf16.msra.mxu1 %v2278_v38  ;;  %v2975_v38 = vld [vmem:[%s3490_s27 + $0x6c] sm:$0xf]  ;;  %v2535_v6 = vld [vmem:[%s3490_s27 + $0x338] sm:$0xf0] }
  0x94   : > { %1260 = vmatpush.bf16.msra.mxu2 %v2406_v39  ;;  %v2183_v39 = vld [vmem:[%s3490_s27 + $0x78] sm:$0xf0]  ;;  %v2995_v12 = vld [vmem:[%s3490_s27 + $0x10c] sm:$0xf] }
  0x95   : > { %1273 = vmatpush.bf16.msra.mxu3 %v2534_v43  ;;  %v3039_v43 = vld [vmem:[%s3490_s27 + $0x26c] sm:$0xf]  ;;  %v2186_v47 = vor.u32 %v2975_v38, %v2183_v39  ;;  %v2135_v11 = vld [vmem:[%s3490_s27 + $0x18] sm:$0xf0] }
  0x96   : > { %1235 = vmatpush.bf16.msra.mxu0 %v2134_v50  ;;  %v2442_v49 = vor.u32 %v3039_v43, %v2439_v44  ;;  %v2971_v50 = vld [vmem:[%s3490_s27 + $0x4c] sm:$0xf]  ;;  %v2263_v14 = vld [vmem:[%s3490_s27 + $0x118] sm:$0xf0] }
  0x97   : > { %1248 = vmatpush.bf16.msra.mxu1 %v2262_v54  ;;  %v2295_v54 = vld [vmem:[%s3490_s27 + $0x158] sm:$0xf0]  ;;  %v3027_v15 = vld [vmem:[%s3490_s27 + $0x20c] sm:$0xf] }
  0x98   : > { %1261 = vmatpush.bf16.msra.mxu2 %v2390_v55  ;;  %v3035_v55 = vld [vmem:[%s3490_s27 + $0x24c] sm:$0xf]  ;;  %v2391_v18 = vld [vmem:[%s3490_s27 + $0x218] sm:$0xf0] }
  0x99   : > { %1274 = vmatpush.bf16.msra.mxu3 %v2518_v58  ;;  %1236 = vmatmul.bf16.vlgmr.msra.gmra.mxu0 %v3617_v31  ;;  %v2551_v58 = vld [vmem:[%s3490_s27 + $0x358] sm:$0xf0]  ;;  %v3059_v19 = vld [vmem:[%s3490_s27 + $0x30c] sm:$0xf] }
  0x9a   : > { %1280 = vmatpush.bf16.msrb.mxu0 %v2250_v59  ;;  %1249 = vmatmul.bf16.vlgmr.msra.gmra.mxu1 %v3619_v32  ;;  %v2170_v59 = vor.u32 %v2971_v50, %v2167_v51  ;;  %v2519_v20 = vld [vmem:[%s3490_s27 + $0x318] sm:$0xf0] }
  0x9b   : > { %1293 = vmatpush.bf16.msrb.mxu1 %v2378_v60  ;;  %1262 = vmatmul.bf16.vlgmr.msra.gmra.mxu2 %v3605_v16  ;;  %v2298_v60 = vor.u32 %v3003_v52, %v2295_v54  ;;  %v2522_v24 = vor.u32 %v3059_v19, %v2519_v20 }
  0x9c   : > { %1306 = vmatpush.bf16.msrb.mxu2 %v2506_v61  ;;  %1275 = vmatmul.bf16.vlgmr.msra.gmra.mxu3 %v3607_v17  ;;  %v2426_v61 = vor.u32 %v3035_v55, %v2423_v56  ;;  %v338_v55 = vld [vmem:[#allocation2 + $0x18] sm:$0xff] }
  0x9d   : > { %1319 = vmatpush.bf16.msrb.mxu3 %v2634_v1  ;;  %v2554_v1 = vor.u32 %v3067_v57, %v2551_v58 }
  0x9e   : > { %1281 = vmatpush.bf16.msrb.mxu0 %v2234_v7  ;;  %v2154_v7 = vor.u32 %v2967_v62, %v2151_v63 }
  0x9f   : > { %1294 = vmatpush.bf16.msrb.mxu1 %v2362_v8  ;;  %v2282_v8 = vor.u32 %v2999_v0, %v2279_v2 }
  0xa0   : > { %1307 = vmatpush.bf16.msrb.mxu2 %v2490_v9  ;;  %v2410_v9 = vor.u32 %v3031_v3, %v2407_v4 }
  0xa1   : > { %1320 = vmatpush.bf16.msrb.mxu3 %v2618_v13  ;;  %v2538_v13 = vor.u32 %v3063_v5, %v2535_v6  ;;  %v339_v5 = vld [vmem:[#allocation2 + $0x8] sm:$0xff] }
  0xa2   : > { %1282 = vmatpush.bf16.msrb.mxu0 %v2218_v21  ;;  %v2138_v21 = vor.u32 %v2963_v10, %v2135_v11 }
  0xa3   : > { %1295 = vmatpush.bf16.msrb.mxu1 %v2346_v22  ;;  %v2266_v22 = vor.u32 %v2995_v12, %v2263_v14 }
  0xa4   : > { %1308 = vmatpush.bf16.msrb.mxu2 %v2474_v23  ;;  %v2394_v23 = vor.u32 %v3027_v15, %v2391_v18 }
  0xa5   : > { %1321 = vmatpush.bf16.msrb.mxu3 %v2602_v27 }
  0xa6   : > { %1283 = vmatpush.bf16.msrb.mxu0 %v2202_v35 }
  0xa7   : > { %1296 = vmatpush.bf16.msrb.mxu1 %v2330_v36 }
  0xa8   : > { %1309 = vmatpush.bf16.msrb.mxu2 %v2458_v37 }
  0xa9   : > { %1322 = vmatpush.bf16.msrb.mxu3 %v2586_v41 }
  0xaa   : > { %1284 = vmatpush.bf16.msrb.mxu0 %v2186_v47 }
  0xab   : > { %1297 = vmatpush.bf16.msrb.mxu1 %v2314_v48 }
  0xac   : > { %1310 = vmatpush.bf16.msrb.mxu2 %v2442_v49 }
  0xad   : > { %1323 = vmatpush.bf16.msrb.mxu3 %v2570_v53 }
  0xae   : > { %1285 = vmatpush.bf16.msrb.mxu0 %v2170_v59 }
  0xaf   : > { %1298 = vmatpush.bf16.msrb.mxu1 %v2298_v60 }
  0xb0   : > { %1311 = vmatpush.bf16.msrb.mxu2 %v2426_v61 }
  0xb1   : > { %1324 = vmatpush.bf16.msrb.mxu3 %v2554_v1 }
  0xb2   : > { %1286 = vmatpush.bf16.msrb.mxu0 %v2154_v7 }
  0xb3   : > { %1299 = vmatpush.bf16.msrb.mxu1 %v2282_v8 }
  0xb4   : > { %1312 = vmatpush.bf16.msrb.mxu2 %v2410_v9 }
  0xb5   : > { %1325 = vmatpush.bf16.msrb.mxu3 %v2538_v13 }
  0xb6   : > { %1287 = vmatpush.bf16.msrb.mxu0 %v2138_v21 }
  0xb7   : > { %1300 = vmatpush.bf16.msrb.mxu1 %v2266_v22 }
  0xb8   : > { %1313 = vmatpush.bf16.msrb.mxu2 %v2394_v23 }
  0xb9   : > { %1326 = vmatpush.bf16.msrb.mxu3 %v2522_v24  ;;  %1288 = vmatmul.bf16.vlgmr.msrb.gmra.mxu0 %v3617_v31 }
  0xba   : > { %1301 = vmatmul.bf16.vlgmr.msrb.gmra.mxu1 %v3619_v32 }
  0xbb   : > { %1314 = vmatmul.bf16.vlgmr.msrb.gmra.mxu2 %v3605_v16 }
  0xbc   : > { %1327 = vmatmul.bf16.vlgmr.msrb.gmra.mxu3 %v3607_v17 }
  0xde   : > { %v1146_v25 = vpop.f32.mrf.mxu1 }
  0xdf   : > { %v1172_v30 = vpop.f32.mrf.mxu3 }
  0xe0   : > { %v1133_v26 = vpop.f32.mrf.mxu0  ;;  %v1159_v28 = vpop.f32.mrf.mxu2 }
  0xe1   : > { %v1147_v27 = vadd.f32 %v1146_v25, %v1133_v26 }
  0xe3   : > { %v1160_v29 = vadd.f32 %v1159_v28, %v1147_v27 }
  0xe5   : > { %v1173_v34 = vadd.f32 %v1172_v30, %v1160_v29 }
  0xe6   : > { %v1148_v35 = vpop.f32.mrf.mxu1 }
  0xe7   : > { %v1332_v36 = vadd.f32 %v1173_v34, %v336_v33  ;;  %v1174_v31 = vpop.f32.mrf.mxu3 }
  0xe8   : > { %v1135_v37 = vpop.f32.mrf.mxu0  ;;  %v1161_v38 = vpop.f32.mrf.mxu2 }
  0xe9   : > { %1336 = vst [vmem:[#allocation2 + $0x10] sm:$0xff] %v1332_v36 }
  0xf6   : > { %v1185_v39 = vpop.f32.mrf.mxu0 }
  0xf7   : > { %v1198_v32 = vpop.f32.mrf.mxu1 }
  0xf8   : > { %v1199_v40 = vadd.f32 %v1198_v32, %v1185_v39 }
  0xfe   : > { %v1211_v16 = vpop.f32.mrf.mxu2  ;;  %v1187_v44 = vpop.f32.mrf.mxu0 }
  0xff   : > { %v1212_v41 = vadd.f32 %v1211_v16, %v1199_v40  ;;  %v1224_v17 = vpop.f32.mrf.mxu3  ;;  %v1200_v45 = vpop.f32.mrf.mxu1 }
 0x101   : > { %v1225_v43 = vadd.f32 %v1224_v17, %v1212_v41 }
 0x103   : > { %v1333_v46 = vadd.f32 %v1225_v43, %v337_v42 }
 0x105   : > { %1337 = vst [vmem:[#allocation2] sm:$0xff] %v1333_v46 }
 0x106   : > { %v1213_v47 = vpop.f32.mrf.mxu2 }
 0x107   : > { %v1226_v48 = vpop.f32.mrf.mxu3 }
 0x116   : > { %v1237_v49 = vpop.f32.mrf.mxu0 }
 0x117   : > { %v1250_v50 = vpop.f32.mrf.mxu1 }
 0x118   : > { %v1251_v51 = vadd.f32 %v1250_v50, %v1237_v49 }
 0x11e   : > { %v1263_v52 = vpop.f32.mrf.mxu2  ;;  %v1239_v57 = vpop.f32.mrf.mxu0 }
 0x11f   : > { %v1264_v53 = vadd.f32 %v1263_v52, %v1251_v51  ;;  %v1276_v54 = vpop.f32.mrf.mxu3  ;;  %v1252_v58 = vpop.f32.mrf.mxu1 }
 0x121   : > { %v1277_v56 = vadd.f32 %v1276_v54, %v1264_v53 }
 0x123   : > { %v1334_v59 = vadd.f32 %v1277_v56, %v338_v55 }
 0x125   : > { %1338 = vst [vmem:[#allocation2 + $0x18] sm:$0xff] %v1334_v59 }
 0x126   : > { %v1265_v60 = vpop.f32.mrf.mxu2 }
 0x127   : > { %v1278_v61 = vpop.f32.mrf.mxu3 }
 0x136   : > { %v1289_v62 = vpop.f32.mrf.mxu0 }
 0x137   : > { %v1302_v63 = vpop.f32.mrf.mxu1 }
 0x138   : > { %v1303_v0 = vadd.f32 %v1302_v63, %v1289_v62 }
 0x13e   : > { %v1315_v1 = vpop.f32.mrf.mxu2  ;;  %v1291_v4 = vpop.f32.mrf.mxu0 }
 0x13f   : > { %v1316_v2 = vadd.f32 %v1315_v1, %v1303_v0  ;;  %v1328_v3 = vpop.f32.mrf.mxu3  ;;  %v1304_v6 = vpop.f32.mrf.mxu1 }
 0x141   : > { %v1329_v7 = vadd.f32 %v1328_v3, %v1316_v2 }
 0x143   : > { %v1335_v8 = vadd.f32 %v1329_v7, %v339_v5  ;;  %1343 = sbr.rel (%p2635_p1) target bundleno = 670 (0x29e), region = 64 }
 0x145   : > { %1339 = vst [vmem:[#allocation2 + $0x8] sm:$0xff] %v1335_v8 }
 0x146   : > { %v1317_v9 = vpop.f32.mrf.mxu2 }
 0x147   : > { %v1330_v10 = vpop.f32.mrf.mxu3 }
 0x148   : > { %v2694_v11 = vld [vmem:[#allocation6 + $0x70] sm:$0xf]  ;;  %v3105_v12 = vld [vmem:[#allocation6 + $0x74] sm:$0xf0]  ;;  %v2686_v24 = vld [vmem:[#allocation6 + $0x60] sm:$0xf] }
 0x149   : > { %v2758_v13 = vld [vmem:[#allocation6 + $0xf0] sm:$0xf]  ;;  %v2695_v14 = vor.u32 %v3105_v12, %v2694_v11  ;;  %v3121_v15 = vld [vmem:[#allocation6 + $0xf4] sm:$0xf0]  ;;  %v3103_v26 = vld [vmem:[#allocation6 + $0x64] sm:$0xf0] }
 0x14a   : > { %v2822_v18 = vld [vmem:[#allocation6 + $0x170] sm:$0xf]  ;;  %v3137_v19 = vld [vmem:[#allocation6 + $0x174] sm:$0xf0]  ;;  %v2759_v20 = vor.u32 %v3121_v15, %v2758_v13  ;;  %v2750_v27 = vld [vmem:[#allocation6 + $0xe0] sm:$0xf]  ;;  %v2687_v29 = vor.u32 %v3103_v26, %v2686_v24 }
 0x14b   : > { %v2823_v21 = vor.u32 %v3137_v19, %v2822_v18  ;;  %v2886_v22 = vld [vmem:[#allocation6 + $0x1f0] sm:$0xf]  ;;  %v3153_v23 = vld [vmem:[#allocation6 + $0x1f4] sm:$0xf0]  ;;  %1760 = vmatpush.bf16.msra.mxu0 %v2695_v14  ;;  %v3119_v28 = vld [vmem:[#allocation6 + $0xe4] sm:$0xf0] }
 0x14c   : > { %v2887_v25 = vor.u32 %v3153_v23, %v2886_v22  ;;  %1773 = vmatpush.bf16.msra.mxu1 %v2759_v20  ;;  %v2751_v30 = vor.u32 %v3119_v28, %v2750_v27  ;;  %v2814_v33 = vld [vmem:[#allocation6 + $0x160] sm:$0xf]  ;;  %v3135_v34 = vld [vmem:[#allocation6 + $0x164] sm:$0xf0]  ;;  %v2678_v38 = vld [vmem:[#allocation6 + $0x50] sm:$0xf] }
 0x14d   : > { %1786 = vmatpush.bf16.msra.mxu2 %v2823_v21  ;;  %v2878_v35 = vld [vmem:[#allocation6 + $0x1e0] sm:$0xf]  ;;  %v2815_v36 = vor.u32 %v3135_v34, %v2814_v33  ;;  %v3151_v37 = vld [vmem:[#allocation6 + $0x1e4] sm:$0xf0]  ;;  %v3101_v31 = vld [vmem:[#allocation6 + $0x54] sm:$0xf0] }
 0x14e   : > { %1799 = vmatpush.bf16.msra.mxu3 %v2887_v25  ;;  %v2879_v39 = vor.u32 %v3151_v37, %v2878_v35  ;;  %v2742_v32 = vld [vmem:[#allocation6 + $0xd0] sm:$0xf]  ;;  %v3117_v40 = vld [vmem:[#allocation6 + $0xd4] sm:$0xf0]  ;;  %v2679_v41 = vor.u32 %v3101_v31, %v2678_v38  ;;  %v2670_v46 = vld [vmem:[#allocation6 + $0x40] sm:$0xf] }
 0x14f   : > { %v2806_v16 = vld [vmem:[#allocation6 + $0x150] sm:$0xf]  ;;  %1761 = vmatpush.bf16.msra.mxu0 %v2687_v29  ;;  %v3133_v17 = vld [vmem:[#allocation6 + $0x154] sm:$0xf0]  ;;  %v2743_v44 = vor.u32 %v3117_v40, %v2742_v32  ;;  %v3099_v47 = vld [vmem:[#allocation6 + $0x44] sm:$0xf0] }
 0x150   : > { %v2870_v42 = vld [vmem:[#allocation6 + $0x1d0] sm:$0xf]  ;;  %v3149_v43 = vld [vmem:[#allocation6 + $0x1d4] sm:$0xf0]  ;;  %1774 = vmatpush.bf16.msra.mxu1 %v2751_v30  ;;  %v2807_v45 = vor.u32 %v3133_v17, %v2806_v16  ;;  %v2734_v48 = vld [vmem:[#allocation6 + $0xc0] sm:$0xf]  ;;  %v2671_v55 = vor.u32 %v3099_v47, %v2670_v46 }
 0x151   : > { %1787 = vmatpush.bf16.msra.mxu2 %v2815_v36  ;;  %v2871_v49 = vor.u32 %v3149_v43, %v2870_v42  ;;  %v3115_v50 = vld [vmem:[#allocation6 + $0xc4] sm:$0xf0]  ;;  %v2798_v51 = vld [vmem:[#allocation6 + $0x140] sm:$0xf]  ;;  %v2662_v58 = vld [vmem:[#allocation6 + $0x30] sm:$0xf] }
 0x152   : > { %1800 = vmatpush.bf16.msra.mxu3 %v2879_v39  ;;  %v3131_v52 = vld [vmem:[#allocation6 + $0x144] sm:$0xf0]  ;;  %v2862_v53 = vld [vmem:[#allocation6 + $0x1c0] sm:$0xf]  ;;  %v2735_v56 = vor.u32 %v3115_v50, %v2734_v48  ;;  %v3097_v59 = vld [vmem:[#allocation6 + $0x34] sm:$0xf0] }
 0x153   : > { %v3147_v54 = vld [vmem:[#allocation6 + $0x1c4] sm:$0xf0]  ;;  %1762 = vmatpush.bf16.msra.mxu0 %v2679_v41  ;;  %v2799_v57 = vor.u32 %v3131_v52, %v2798_v51  ;;  %v2726_v60 = vld [vmem:[#allocation6 + $0xb0] sm:$0xf]  ;;  %v3113_v62 = vld [vmem:[#allocation6 + $0xb4] sm:$0xf0]  ;;  %v2663_v3 = vor.u32 %v3097_v59, %v2662_v58 }
 0x154   : > { %1775 = vmatpush.bf16.msra.mxu1 %v2743_v44  ;;  %v2863_v61 = vor.u32 %v3147_v54, %v2862_v53  ;;  %v2790_v63 = vld [vmem:[#allocation6 + $0x130] sm:$0xf]  ;;  %v3129_v0 = vld [vmem:[#allocation6 + $0x134] sm:$0xf0]  ;;  %v2727_v4 = vor.u32 %v3113_v62, %v2726_v60  ;;  %v2654_v6 = vld [vmem:[#allocation6 + $0x20] sm:$0xf] }
 0x155   : > { %1788 = vmatpush.bf16.msra.mxu2 %v2807_v45  ;;  %v2854_v1 = vld [vmem:[#allocation6 + $0x1b0] sm:$0xf]  ;;  %v3145_v2 = vld [vmem:[#allocation6 + $0x1b4] sm:$0xf0]  ;;  %v2791_v5 = vor.u32 %v3129_v0, %v2790_v63  ;;  %v3095_v7 = vld [vmem:[#allocation6 + $0x24] sm:$0xf0] }
 0x156   : > { %1801 = vmatpush.bf16.msra.mxu3 %v2871_v49  ;;  %v2718_v8 = vld [vmem:[#allocation6 + $0xa0] sm:$0xf]  ;;  %v2855_v9 = vor.u32 %v3145_v2, %v2854_v1  ;;  %v3111_v10 = vld [vmem:[#allocation6 + $0xa4] sm:$0xf0]  ;;  %v2655_v15 = vor.u32 %v3095_v7, %v2654_v6  ;;  %v2646_v18 = vld [vmem:[#allocation6 + $0x10] sm:$0xf] }
 0x157   : > { %1763 = vmatpush.bf16.msra.mxu0 %v2671_v55  ;;  %v2782_v11 = vld [vmem:[#allocation6 + $0x120] sm:$0xf]  ;;  %v3127_v12 = vld [vmem:[#allocation6 + $0x124] sm:$0xf0]  ;;  %v2719_v19 = vor.u32 %v3111_v10, %v2718_v8  ;;  %v3093_v21 = vld [vmem:[#allocation6 + $0x14] sm:$0xf0] }
 0x158   : > { %1776 = vmatpush.bf16.msra.mxu1 %v2735_v56  ;;  %v2846_v13 = vld [vmem:[#allocation6 + $0x1a0] sm:$0xf]  ;;  %v3143_v14 = vld [vmem:[#allocation6 + $0x1a4] sm:$0xf0]  ;;  %v2783_v20 = vor.u32 %v3127_v12, %v2782_v11  ;;  %v2710_v22 = vld [vmem:[#allocation6 + $0x90] sm:$0xf]  ;;  %v2647_v33 = vor.u32 %v3093_v21, %v2646_v18 }
 0x159   : > { %1789 = vmatpush.bf16.msra.mxu2 %v2799_v57  ;;  %v3109_v23 = vld [vmem:[#allocation6 + $0x94] sm:$0xf0]  ;;  %v2847_v24 = vor.u32 %v3143_v14, %v2846_v13  ;;  %v2774_v25 = vld [vmem:[#allocation6 + $0x110] sm:$0xf]  ;;  %v2638_v29 = vld [vmem:[#allocation6] sm:$0xf] }
 0x15a   : > { %1802 = vmatpush.bf16.msra.mxu3 %v2863_v61  ;;  %v3125_v26 = vld [vmem:[#allocation6 + $0x114] sm:$0xf0]  ;;  %v2838_v27 = vld [vmem:[#allocation6 + $0x190] sm:$0xf]  ;;  %v3091_v30 = vld [vmem:[#allocation6 + $0x4] sm:$0xf0]  ;;  %v2711_v37 = vor.u32 %v3109_v23, %v2710_v22 }
 0x15b   : > { %1764 = vmatpush.bf16.msra.mxu0 %v2663_v3  ;;  %v3141_v28 = vld [vmem:[#allocation6 + $0x194] sm:$0xf0]  ;;  %v2702_v34 = vld [vmem:[#allocation6 + $0x80] sm:$0xf]  ;;  %v3107_v35 = vld [vmem:[#allocation6 + $0x84] sm:$0xf0]  ;;  %v2775_v38 = vor.u32 %v3125_v26, %v2774_v25  ;;  %v2639_v45 = vor.u32 %v3091_v30, %v2638_v29 }
 0x15c   : > { %1777 = vmatpush.bf16.msra.mxu1 %v2727_v4  ;;  %v2766_v36 = vld [vmem:[#allocation6 + $0x100] sm:$0xf]  ;;  %v3123_v31 = vld [vmem:[#allocation6 + $0x104] sm:$0xf0]  ;;  %v2839_v40 = vor.u32 %v3141_v28, %v2838_v27  ;;  %v3104_v16 = vld [vmem:[#allocation6 + $0x74] sm:$0xf]  ;;  %v2703_v49 = vor.u32 %v3107_v35, %v2702_v34 }
 0x15d   : > { %1790 = vmatpush.bf16.msra.mxu2 %v2791_v5  ;;  %v2830_v39 = vld [vmem:[#allocation6 + $0x180] sm:$0xf]  ;;  %v3139_v32 = vld [vmem:[#allocation6 + $0x184] sm:$0xf0]  ;;  %v2696_v41 = vld [vmem:[#allocation6 + $0x78] sm:$0xf0]  ;;  %v2767_v50 = vor.u32 %v3123_v31, %v2766_v36 }
 0x15e   : > { %1803 = vmatpush.bf16.msra.mxu3 %v2855_v9  ;;  %v3120_v17 = vld [vmem:[#allocation6 + $0xf4] sm:$0xf]  ;;  %v2760_v42 = vld [vmem:[#allocation6 + $0xf8] sm:$0xf0]  ;;  %v1348_v48 = vld [vmem:[%s3883_s2] sm:$0xf]  ;;  %v2831_v54 = vor.u32 %v3139_v32, %v2830_v39  ;;  %v2699_v55 = vor.u32 %v3104_v16, %v2696_v41 }
 0x15f   : > { %1765 = vmatpush.bf16.msra.mxu0 %v2655_v15  ;;  %v3136_v43 = vld [vmem:[#allocation6 + $0x174] sm:$0xf]  ;;  %v2824_v44 = vld [vmem:[#allocation6 + $0x178] sm:$0xf0]  ;;  %v3102_v52 = vld [vmem:[#allocation6 + $0x64] sm:$0xf]  ;;  %v2763_v56 = vor.u32 %v3120_v17, %v2760_v42 }
 0x160   : > { %1778 = vmatpush.bf16.msra.mxu1 %v2719_v19  ;;  %v3152_v46 = vld [vmem:[#allocation6 + $0x1f4] sm:$0xf]  ;;  %v1346_v47 = vld [vmem:[#allocation2 + $0x18] sm:$0xff]  ;;  %v1352_v53 = vperm.slane %v1348_v48, 2  ;;  %v2688_v57 = vld [vmem:[#allocation6 + $0x68] sm:$0xf0]  ;;  %v2827_v60 = vor.u32 %v3136_v43, %v2824_v44 }
 0x161   : > { %1791 = vmatpush.bf16.msra.mxu2 %v2783_v20  ;;  %v2888_v51 = vld [vmem:[#allocation6 + $0x1f8] sm:$0xf0]  ;;  %v3118_v58 = vld [vmem:[#allocation6 + $0xe4] sm:$0xf]  ;;  %v1344_v59 = vld [vmem:[#allocation2 + $0x10] sm:$0xff]  ;;  %v1350_v63 = vperm.slane %v1348_v48, 0  ;;  %v2691_v12 = vor.u32 %v3102_v52, %v2688_v57 }
 0x162   : > { %1804 = vmatpush.bf16.msra.mxu3 %v2847_v24  ;;  %v2752_v61 = vld [vmem:[#allocation6 + $0xe8] sm:$0xf0]  ;;  %v1360_v62 = vadd.f32 %v1352_v53, %v1346_v47  ;;  %v1353_v1 = vperm.slane %v1348_v48, 3  ;;  %v1345_v2 = vld [vmem:[#allocation2] sm:$0xff]  ;;  %v2891_v3 = vor.u32 %v3152_v46, %v2888_v51  ;;  %v1351_v6 = vperm.slane %v1348_v48, 1 }
 0x163   : > { %1766 = vmatpush.bf16.msra.mxu0 %v2647_v33  ;;  %v1347_v0 = vld [vmem:[#allocation2 + $0x8] sm:$0xff]  ;;  %v3134_v4 = vld [vmem:[#allocation6 + $0x164] sm:$0xf]  ;;  %v1358_v10 = vadd.f32 %v1350_v63, %v1344_v59  ;;  %v2755_v13 = vor.u32 %v3118_v58, %v2752_v61  ;;  %v3100_v14 = vld [vmem:[#allocation6 + $0x54] sm:$0xf]  ;;  %vm2026_vm0 = vcmask 523264  }
 0x164   : > { %1779 = vmatpush.bf16.msra.mxu1 %v2711_v37  ;;  %v2816_v5 = vld [vmem:[#allocation6 + $0x168] sm:$0xf0]  ;;  %v3150_v7 = vld [vmem:[#allocation6 + $0x1e4] sm:$0xf]  ;;  %v1364_v9 = vmax.f32 %v1360_v62, 0.0  ;;  %v1361_v11 = vadd.f32 %v1353_v1, %v1347_v0  ;;  %v1359_v18 = vadd.f32 %v1351_v6, %v1345_v2 }
 0x165   : > { %1792 = vmatpush.bf16.msra.mxu2 %v2775_v38  ;;  %v2880_v8 = vld [vmem:[#allocation6 + $0x1e8] sm:$0xf0]  ;;  %v2680_v15 = vld [vmem:[#allocation6 + $0x58] sm:$0xf0]  ;;  %v2819_v19 = vor.u32 %v3134_v4, %v2816_v5  ;;  %v3116_v21 = vld [vmem:[#allocation6 + $0xd4] sm:$0xf] }
 0x166   : > { %1805 = vmatpush.bf16.msra.mxu3 %v2839_v40  ;;  %v3794_v20 = vpack.c.bf16 %v1364_v9, %v1364_v9  ;;  %v2744_v22 = vld [vmem:[#allocation6 + $0xd8] sm:$0xf0]  ;;  %v1362_v23 = vmax.f32 %v1358_v10, 0.0  ;;  %v1365_v24 = vmax.f32 %v1361_v11, 0.0  ;;  %v2883_v25 = vor.u32 %v3150_v7, %v2880_v8  ;;  %v3132_v26 = vld [vmem:[#allocation6 + $0x154] sm:$0xf] }
 0x167   : > { %1767 = vmatpush.bf16.msra.mxu0 %v2639_v45  ;;  %v2808_v27 = vld [vmem:[#allocation6 + $0x158] sm:$0xf0]  ;;  %v1363_v28 = vmax.f32 %v1359_v18, 0.0  ;;  %v3148_v29 = vld [vmem:[#allocation6 + $0x1d4] sm:$0xf]  ;;  %v2683_v35 = vor.u32 %v3100_v14, %v2680_v15  ;;  %v2747_v37 = vor.u32 %v3116_v21, %v2744_v22 }
 0x168   : > { %1780 = vmatpush.bf16.msra.mxu1 %v2703_v49  ;;  %v2872_v30 = vld [vmem:[#allocation6 + $0x1d8] sm:$0xf0]  ;;  %v3797_v33 = vpack.c.bf16 %v1362_v23, %v1362_v23  ;;  %v3799_v34 = vpack.c.bf16 %v1365_v24, %v1365_v24  ;;  %v2811_v38 = vor.u32 %v3132_v26, %v2808_v27  ;;  %v3098_v31 = vld [vmem:[#allocation6 + $0x44] sm:$0xf]  ;;  %v2672_v39 = vld [vmem:[#allocation6 + $0x48] sm:$0xf0] }
 0x169   : > { %1793 = vmatpush.bf16.msra.mxu2 %v2767_v50  ;;  %v3801_v36 = vpack.c.bf16 %v1363_v28, %v1363_v28  ;;  %v3114_v32 = vld [vmem:[#allocation6 + $0xc4] sm:$0xf]  ;;  %v2875_v40 = vor.u32 %v3148_v29, %v2872_v30  ;;  %v2736_v16 = vld [vmem:[#allocation6 + $0xc8] sm:$0xf0]  ;;  %v2675_v44 = vor.u32 %v3098_v31, %v2672_v39  ;;  %v3096_v47 = vld [vmem:[#allocation6 + $0x34] sm:$0xf] }
 0x16a   : > { %1806 = vmatpush.bf16.msra.mxu3 %v2831_v54  ;;  %1768 = vmatmul.bf16.vlgmr.msra.gmra.mxu0 %v3797_v33  ;;  %v3130_v41 = vld [vmem:[#allocation6 + $0x144] sm:$0xf]  ;;  %v2800_v17 = vld [vmem:[#allocation6 + $0x148] sm:$0xf0]  ;;  %v2739_v45 = vor.u32 %v3114_v32, %v2736_v16  ;;  %v2664_v48 = vld [vmem:[#allocation6 + $0x38] sm:$0xf0] }
 0x16b   : > { %1812 = vmatpush.bf16.msrb.mxu0 %v2699_v55  ;;  %1781 = vmatmul.bf16.vlgmr.msra.gmra.mxu1 %v3801_v36  ;;  %v3146_v42 = vld [vmem:[#allocation6 + $0x1c4] sm:$0xf]  ;;  %v2864_v43 = vld [vmem:[#allocation6 + $0x1c8] sm:$0xf0]  ;;  %v2803_v46 = vor.u32 %v3130_v41, %v2800_v17  ;;  %v3112_v49 = vld [vmem:[#allocation6 + $0xb4] sm:$0xf] }
 0x16c   : > { %1825 = vmatpush.bf16.msrb.mxu1 %v2763_v56  ;;  %1794 = vmatmul.bf16.vlgmr.msra.gmra.mxu2 %v3794_v20  ;;  %v2867_v50 = vor.u32 %v3146_v42, %v2864_v43  ;;  %v2728_v51 = vld [vmem:[#allocation6 + $0xb8] sm:$0xf0]  ;;  %v3128_v52 = vld [vmem:[#allocation6 + $0x134] sm:$0xf]  ;;  %v2667_v56 = vor.u32 %v3096_v47, %v2664_v48  ;;  %v3094_v57 = vld [vmem:[#allocation6 + $0x24] sm:$0xf] }
 0x16d   : > { %1838 = vmatpush.bf16.msrb.mxu2 %v2827_v60  ;;  %1807 = vmatmul.bf16.vlgmr.msra.gmra.mxu3 %v3799_v34  ;;  %v2792_v53 = vld [vmem:[#allocation6 + $0x138] sm:$0xf0]  ;;  %v3144_v54 = vld [vmem:[#allocation6 + $0x1b4] sm:$0xf]  ;;  %v2731_v58 = vor.u32 %v3112_v49, %v2728_v51  ;;  %v2656_v60 = vld [vmem:[#allocation6 + $0x28] sm:$0xf0] }
 0x16e   : > { %1851 = vmatpush.bf16.msrb.mxu3 %v2891_v3  ;;  %v2856_v55 = vld [vmem:[#allocation6 + $0x1b8] sm:$0xf0]  ;;  %v2795_v59 = vor.u32 %v3128_v52, %v2792_v53  ;;  %v3110_v61 = vld [vmem:[#allocation6 + $0xa4] sm:$0xf]  ;;  %v2720_v62 = vld [vmem:[#allocation6 + $0xa8] sm:$0xf0]  ;;  %v2659_v4 = vor.u32 %v3094_v57, %v2656_v60 }
 0x16f   : > { %1813 = vmatpush.bf16.msrb.mxu0 %v2691_v12  ;;  %v2859_v63 = vor.u32 %v3144_v54, %v2856_v55  ;;  %v3126_v0 = vld [vmem:[#allocation6 + $0x124] sm:$0xf]  ;;  %v2784_v1 = vld [vmem:[#allocation6 + $0x128] sm:$0xf0]  ;;  %v2723_v5 = vor.u32 %v3110_v61, %v2720_v62  ;;  %v3092_v7 = vld [vmem:[#allocation6 + $0x14] sm:$0xf] }
 0x170   : > { %1826 = vmatpush.bf16.msrb.mxu1 %v2755_v13  ;;  %v3142_v2 = vld [vmem:[#allocation6 + $0x1a4] sm:$0xf]  ;;  %v2848_v3 = vld [vmem:[#allocation6 + $0x1a8] sm:$0xf0]  ;;  %v2787_v6 = vor.u32 %v3126_v0, %v2784_v1  ;;  %v2648_v8 = vld [vmem:[#allocation6 + $0x18] sm:$0xf0] }
 0x171   : > { %1839 = vmatpush.bf16.msrb.mxu2 %v2819_v19  ;;  %v3108_v9 = vld [vmem:[#allocation6 + $0x94] sm:$0xf]  ;;  %v2851_v10 = vor.u32 %v3142_v2, %v2848_v3  ;;  %v2712_v11 = vld [vmem:[#allocation6 + $0x98] sm:$0xf0]  ;;  %v2651_v18 = vor.u32 %v3092_v7, %v2648_v8  ;;  %v3090_v22 = vld [vmem:[#allocation6 + $0x4] sm:$0xf] }
 0x172   : > { %1852 = vmatpush.bf16.msrb.mxu3 %v2883_v25  ;;  %v3124_v12 = vld [vmem:[#allocation6 + $0x114] sm:$0xf]  ;;  %v2776_v13 = vld [vmem:[#allocation6 + $0x118] sm:$0xf0]  ;;  %v2715_v19 = vor.u32 %v3108_v9, %v2712_v11  ;;  %v2640_v23 = vld [vmem:[#allocation6 + $0x8] sm:$0xf0] }
 0x173   : > { %1814 = vmatpush.bf16.msrb.mxu0 %v2683_v35  ;;  %v3140_v14 = vld [vmem:[#allocation6 + $0x194] sm:$0xf]  ;;  %v2840_v15 = vld [vmem:[#allocation6 + $0x198] sm:$0xf0]  ;;  %v2779_v21 = vor.u32 %v3124_v12, %v2776_v13  ;;  %v3106_v24 = vld [vmem:[#allocation6 + $0x84] sm:$0xf]  ;;  %v2643_v35 = vor.u32 %v3090_v22, %v2640_v23 }
 0x174   : > { %1827 = vmatpush.bf16.msrb.mxu1 %v2747_v37  ;;  %v2843_v25 = vor.u32 %v3140_v14, %v2840_v15  ;;  %v2704_v26 = vld [vmem:[#allocation6 + $0x88] sm:$0xf0]  ;;  %v3122_v27 = vld [vmem:[#allocation6 + $0x104] sm:$0xf]  ;;  %v3161_v39 = vld [vmem:[%s3886_s5 + $0x38] sm:$0xff] }
 0x175   : > { %1840 = vmatpush.bf16.msrb.mxu2 %v2811_v38  ;;  %v2768_v28 = vld [vmem:[#allocation6 + $0x108] sm:$0xf0]  ;;  %v3138_v29 = vld [vmem:[#allocation6 + $0x184] sm:$0xf]  ;;  %v2707_v37 = vor.u32 %v3106_v24, %v2704_v26  ;;  %v3160_v32 = vld [vmem:[%s3886_s5 + $0x30] sm:$0xff] }
 0x176   : > { %1853 = vmatpush.bf16.msrb.mxu3 %v2875_v40  ;;  %v2832_v30 = vld [vmem:[#allocation6 + $0x188] sm:$0xf0]  ;;  %v2771_v38 = vor.u32 %v3122_v27, %v2768_v28  ;;  %v3158_v16 = vld [vmem:[%s3886_s5 + $0x20] sm:$0xff]  ;;  %v3168_v17 = vld [vmem:[%s3886_s5 + $0x70] sm:$0xff] }
 0x177   : > { %1815 = vmatpush.bf16.msrb.mxu0 %v2675_v44  ;;  %v2835_v31 = vor.u32 %v3138_v29, %v2832_v30  ;;  %v3159_v40 = vld [vmem:[%s3886_s5 + $0x28] sm:$0xff]  ;;  %v3154_v41 = vld [vmem:[%s3886_s5] sm:$0xff]  ;;  %v3165_v44 = vld [vmem:[%s3886_s5 + $0x58] sm:$0xff] }
 0x178   : > { %1828 = vmatpush.bf16.msrb.mxu1 %v2739_v45  ;;  %v3167_v42 = vld [vmem:[%s3886_s5 + $0x68] sm:$0xff]  ;;  %v3166_v43 = vld [vmem:[%s3886_s5 + $0x60] sm:$0xff] }
 0x179   : > { %1841 = vmatpush.bf16.msrb.mxu2 %v2803_v46  ;;  %v1434_v45 = vld [vmem:[%s3885_s4] sm:$0x3]  ;;  %v3164_v46 = vld [vmem:[%s3886_s5 + $0x50] sm:$0xff]  ;;  %v3163_v51 = vld [vmem:[%s3886_s5 + $0x48] sm:$0xff] }
 0x17a   : > { %1854 = vmatpush.bf16.msrb.mxu3 %v2867_v50  ;;  %v1436_v47 = vperm.slane %v1434_v45, 0  ;;  %v3162_v55 = vld [vmem:[%s3886_s5 + $0x40] sm:$0xff]  ;;  %v1437_v0 = vperm.slane %v1434_v45, 1 }
 0x17b   : > { %1816 = vmatpush.bf16.msrb.mxu0 %v2667_v56 }
 0x17c   : > { %1829 = vmatpush.bf16.msrb.mxu1 %v2731_v58 }
 0x17d   : > { %1842 = vmatpush.bf16.msrb.mxu2 %v2795_v59 }
 0x17e   : > { %1855 = vmatpush.bf16.msrb.mxu3 %v2859_v63 }
 0x17f   : > { %1817 = vmatpush.bf16.msrb.mxu0 %v2659_v4 }
 0x180   : > { %1830 = vmatpush.bf16.msrb.mxu1 %v2723_v5 }
 0x181   : > { %1843 = vmatpush.bf16.msrb.mxu2 %v2787_v6 }
 0x182   : > { %1856 = vmatpush.bf16.msrb.mxu3 %v2851_v10 }
 0x183   : > { %1818 = vmatpush.bf16.msrb.mxu0 %v2651_v18 }
 0x184   : > { %1831 = vmatpush.bf16.msrb.mxu1 %v2715_v19  ;;  %v3232_v19 = vld [vmem:[%s3887_s6] ss:$0 sm:$0xff] }
 0x185   : > { %1844 = vmatpush.bf16.msrb.mxu2 %v2779_v21 }
 0x186   : > { %1857 = vmatpush.bf16.msrb.mxu3 %v2843_v25 }
 0x187   : > { %1819 = vmatpush.bf16.msrb.mxu0 %v2643_v35 }
 0x188   : > { %1832 = vmatpush.bf16.msrb.mxu1 %v2707_v37 }
 0x189   : > { %1845 = vmatpush.bf16.msrb.mxu2 %v2771_v38 }
 0x18a   : > { %1858 = vmatpush.bf16.msrb.mxu3 %v2835_v31  ;;  %1820 = vmatmul.bf16.vlgmr.msrb.gmra.mxu0 %v3797_v33  ;;  %v3157_v33 = vld [vmem:[%s3886_s5 + $0x18] sm:$0xff] }
 0x18b   : > { %2000 = vmatpush.bf16.msra.mxu0 %v3161_v39  ;;  %1833 = vmatmul.bf16.vlgmr.msrb.gmra.mxu1 %v3801_v36  ;;  %v3169_v36 = vld [vmem:[%s3886_s5 + $0x78] sm:$0xff] }
 0x18c   : > { %1846 = vmatmul.bf16.vlgmr.msrb.gmra.mxu2 %v3794_v20  ;;  %v3156_v20 = vld [vmem:[%s3886_s5 + $0x10] sm:$0xff]  ;;  %2013 = vmatpush.bf16.msra.mxu1 %v3169_v36 }
 0x18d   : > { %1859 = vmatmul.bf16.vlgmr.msrb.gmra.mxu3 %v3799_v34  ;;  %v3155_v34 = vld [vmem:[%s3886_s5 + $0x8] sm:$0xff] }
 0x18f   : > { %2001 = vmatpush.bf16.msra.mxu0 %v3160_v32 }
 0x190   : > { %2014 = vmatpush.bf16.msra.mxu1 %v3168_v17 }
 0x193   : > { %2002 = vmatpush.bf16.msra.mxu0 %v3159_v40 }
 0x194   : > { %2015 = vmatpush.bf16.msra.mxu1 %v3167_v42 }
 0x197   : > { %2003 = vmatpush.bf16.msra.mxu0 %v3158_v16 }
 0x198   : > { %2016 = vmatpush.bf16.msra.mxu1 %v3166_v43 }
 0x19b   : > { %2004 = vmatpush.bf16.msra.mxu0 %v3157_v33 }
 0x19c   : > { %2017 = vmatpush.bf16.msra.mxu1 %v3165_v44 }
 0x19f   : > { %2005 = vmatpush.bf16.msra.mxu0 %v3156_v20 }
 0x1a0   : > { %2018 = vmatpush.bf16.msra.mxu1 %v3164_v46 }
 0x1a3   : > { %2006 = vmatpush.bf16.msra.mxu0 %v3155_v34 }
 0x1a4   : > { %2019 = vmatpush.bf16.msra.mxu1 %v3163_v51 }
 0x1a7   : > { %2007 = vmatpush.bf16.msra.mxu0 %v3154_v41 }
 0x1a8   : > { %2020 = vmatpush.bf16.msra.mxu1 %v3162_v55 }
 0x1e7   : > { %v1769_v48 = vpop.f32.mrf.mxu0 }
 0x1e8   : > { %v1770_v49 = vadd.f32 %v1769_v48, %v1436_v47  ;;  %v1782_v50 = vpop.f32.mrf.mxu1 }
 0x1ea   : > { %v1783_v52 = vadd.f32 %v1782_v50, %v1770_v49 }
 0x1ef   : > { %v1795_v53 = vpop.f32.mrf.mxu2  ;;  %v1771_v58 = vpop.f32.mrf.mxu0 }
 0x1f0   : > { %v1796_v54 = vadd.f32 %v1795_v53, %v1783_v52  ;;  %v1808_v56 = vpop.f32.mrf.mxu3  ;;  %v1784_v59 = vpop.f32.mrf.mxu1 }
 0x1f2   : > { %v1809_v57 = vadd.f32 %v1808_v56, %v1796_v54 }
 0x1f4   : > { %v1864_v60 = vmax.f32 %v1809_v57, 0.0 }
 0x1f6   : > { %v1866_v62 = vpack.c.bf16 %v1864_v60, %v1864_v60 }
 0x1f7   : > { %v1797_v61 = vpop.f32.mrf.mxu2 }
 0x1f8   : > { %2008 = vmatmul.bf16.vlgmr.msra.gmra.mxu0 %v1866_v62  ;;  %v1810_v63 = vpop.f32.mrf.mxu3 }
 0x207   : > { %v1821_v1 = vpop.f32.mrf.mxu0 }
 0x208   : > { %v1822_v2 = vadd.f32 %v1821_v1, %v1437_v0  ;;  %v1834_v3 = vpop.f32.mrf.mxu1 }
 0x20a   : > { %v1835_v4 = vadd.f32 %v1834_v3, %v1822_v2 }
 0x20f   : > { %v1847_v5 = vpop.f32.mrf.mxu2  ;;  %v1823_v8 = vpop.f32.mrf.mxu0 }
 0x210   : > { %v1848_v6 = vadd.f32 %v1847_v5, %v1835_v4  ;;  %v1860_v7 = vpop.f32.mrf.mxu3  ;;  %v1836_v9 = vpop.f32.mrf.mxu1 }
 0x212   : > { %v1861_v10 = vadd.f32 %v1860_v7, %v1848_v6 }
 0x214   : > { %v1865_v11 = vmax.f32 %v1861_v10, 0.0 }
 0x216   : > { %v1867_v12 = vpack.c.bf16 %v1865_v11, %v1865_v11 }
 0x217   : > { %v1849_v13 = vpop.f32.mrf.mxu2 }
 0x218   : > { %v1862_v14 = vpop.f32.mrf.mxu3  ;;  %2021 = vmatmul.bf16.vlgmr.msra.gmra.mxu1 %v1867_v12 }
 0x275   : > { %v2009_v15 = vpop.f32.mrf.mxu0 }
 0x276   : > { %v2010_v21 = vadd.f32 %v3232_v19, %v2009_v15 }
 0x27d   : > { %v2011_v18 = vpop.f32.mrf.mxu0 }
 0x295   : > { %v2022_v22 = vpop.f32.mrf.mxu1 }
 0x296   : > { %v2023_v23 = vadd.f32 %v2022_v22, %v2010_v21 }
 0x298   : > { %2027 = vst.msk [vmem:[#allocation8] sm:$0xff] %vm2026_vm0, %v2023_v23 }
 0x29d   : > { %v2024_v24 = vpop.f32.mrf.mxu1 }
 0x29e PF: > { %p3191_p4 = scmp.eq.s32.totalorder %s3431_s28, 1  ;;  %s3371_s15 = smov [#allocation8]  }
 0x29f   : > { %s2034_s16 = sshll.u32 %s3371_s15, 4  ;;  %s2036_s21 = sshll.u32 %s3888_s7, 4  ;;  %s2035_s16 = int_to_ptr.vmem [resolvable:$true] %s2034_s16  ;;  %s2037_s21 = int_to_ptr.hbm [resolvable:$true] %s2036_s21 }
 0x2a0   : > { %3177 = dma.vmem_to_hbm [thread:$0]  (%p3191_p4), %s2035_s16, 128, %s2037_s21, [#allocation5]  }
 0x2a1   : > { %3346 = dma.done.wait (%p3191_p4), [#allocation5], 128  }
 0x2a2   : > { %3348 = vsyncadd (%p3191_p4), [#allocation5], 4294967168 }
 0x2a3 PF: > { %p19_p5 = scmp.ge.s32.totalorder %s3456_s13, 4   ;;  %s3892_s24 = smov %s3355_s25 }
 0x2a4   : > { %s3893_s25 = smov %s3359_s26  ;;  %s3894_s26 = smov %s3466_s18 }
 0x2a5   : > { %s3895_s27 = smov %s3456_s13  ;;  %21 = sbr.rel (!%p19_p5) target bundleno = 5 (0x5), region = 100 }
 0x2aa   :  { %2050 = vsyncpa [#allocation4], 1 }
 0x2ab   :  { %2052 = vsyncpa [#allocation4 + $0x1], 1 }
 0x2ac   :  { %2053 = vsyncpa [#allocation7], 1 }
 0x2ad   :  { %2054 = vsyncpa [#allocation5], 1 }
 0x2ae   :  { %2056 = vsyncpa [#allocation5 + $0x1], 1 }

</bundles_post_ra>
